<compile_context>
chip_gen: v5e
topology: v5e:2x2
jax: 0.10.0
libtpu: 0.0.40
codegen_flags: <defaults>
</compile_context>

<pallas_src>
import functools

import numpy as np
import jax
import jax.numpy as jnp
from jax import lax
from jax.experimental import pallas as pl
from jax.experimental.pallas import tpu as pltpu


# ---------------------------------------------------------------------------
# Fused Pallas kernel: whole batch, all ASPP branches, one invocation
# ---------------------------------------------------------------------------
def _aspp_fused_kernel(x_ref, w_ref, m_ref, b_ref, o_ref, *,
                       W, offsets, cout, n_conv_branch):
    # x_ref: (N, cin_p, HW)            lane-dense flattened NCHW input (0-padded channels)
    # w_ref: (n_branch*Cout, K)        packed block-structured weights, BN scale folded
    # m_ref: (n_taps, 1, HW)           zero-padding validity mask per tap
    # b_ref: (n_branch*Cout, 1)        folded BN bias
    # o_ref: (N, n_branch*Cout, HW)    channel-concatenated output (NCHW-flat)
    n_batch, _, hw = x_ref.shape
    n_conv = n_conv_branch * cout                     # rows of the conv branches
    w = w_ref[...]
    b = b_ref[...]
    inv_hw = 1.0 / hw

    for n in range(n_batch):                          # N == 2: tiny static loop
        xn = x_ref[n]                                 # (cin_p, HW), VMEM resident
        # In-register im2col: 25 shifted copies of the resident tile.  Shifts run
        # on the XLU (pltpu.roll); conv zero-padding is applied via masks.
        pieces = [xn]                                 # tap 0 = shared centre window
        for t in range(1, len(offsets)):
            dy, dx = offsets[t]
            shift = (-(dy * W + dx)) % hw
            shifted = pltpu.roll(xn, shift, axis=1)
            pieces.append(shifted * m_ref[t])
        col = jnp.concatenate(pieces, axis=0)         # (n_taps*cin_p, HW)

        # ONE MXU matmul -> channel-concat of c0 + all dilated branches, plus the
        # per-pixel imagepool 1x1 conv (pooled just below).
        y = jnp.dot(w, col, preferred_element_type=jnp.float32)   # (nb*Cout, HW)

        # c0 + dilated branches: folded-BN bias + ReLU, lane-dense store.
        o_ref[n, 0:n_conv, :] = jnp.maximum(y[0:n_conv, :] + b[0:n_conv, :], 0.0)

        # imagepool: 1x1 conv is linear => conv(mean(x)) == mean(conv(x));
        # bilinear upsample from a 1x1 source == constant broadcast.
        pooled = jnp.sum(y[n_conv:, :], axis=1, keepdims=True) * inv_hw
        pooled = jnp.maximum(pooled + b[n_conv:, :], 0.0)         # (Cout, 1)
        o_ref[n, n_conv:, :] = jnp.broadcast_to(pooled, (cout, hw))


# ---------------------------------------------------------------------------
# Wrapper: layout plumbing, BN folding and block-structured weight packing
# ---------------------------------------------------------------------------
def aspp_forward(x_nchw, params, rates, eps=1e-5):
    rates = tuple(int(r) for r in rates)
    x = x_nchw.astype(jnp.float32)
    N, Cin, H, W = x.shape
    HW = H * W
    cin_p = ((Cin + 7) // 8) * 8                  # pad channels to a sublane group
    n_rates = len(rates)
    n_branch = 2 + n_rates                        # c0, c1..cN, imagepool
    n_conv_branch = 1 + n_rates
    Cout = params["c0"][0].shape[-1]

    # lane-dense flattened input (N, cin_p, H*W); pure XLA reshape/pad
    xflat = x.reshape(N, Cin, HW)
    if cin_p != Cin:
        xflat = jnp.pad(xflat, ((0, 0), (0, cin_p - Cin), (0, 0)))

    # tap table: (dy, dx) shifts; tap 0 is the shared centre window
    offsets = [(0, 0)]
    for r in rates:
        for ky in range(3):
            for kx in range(3):
                if ky == 1 and kx == 1:
                    continue
                offsets.append((r * (ky - 1), r * (kx - 1)))
    n_taps = len(offsets)                         # 25

    # zero-padding validity masks, one (1, HW) row per tap (tiny constant input)
    hh, ww = np.meshgrid(np.arange(H), np.arange(W), indexing="ij")
    masks = np.zeros((n_taps, 1, HW), np.float32)
    for t, (dy, dx) in enumerate(offsets):
        valid = (hh + dy >= 0) & (hh + dy < H) & (ww + dx >= 0) & (ww + dx < W)
        masks[t, 0, :] = valid.reshape(HW).astype(np.float32)

    # fold eval-mode BN and pack every branch into one block-structured weight
    def fold(gamma, beta, mean, var):
        scale = np.asarray(gamma) / np.sqrt(np.asarray(var) + eps)
        return scale, np.asarray(beta) - np.asarray(mean) * scale

    K = n_taps * cin_p
    w_pack = np.zeros((n_branch * Cout, K), np.float32)
    b_pack = np.zeros((n_branch * Cout, 1), np.float32)

    # c0: 1x1 conv -> centre-tap columns only
    w0, g, bt, mu, vr = params["c0"]
    s, bb = fold(g, bt, mu, vr)
    w_pack[0:Cout, 0:Cin] = (np.asarray(w0) * s[None, :]).T
    b_pack[0:Cout, 0] = bb

    # dilated 3x3 branches
    for i in range(n_rates):
        w3, g, bt, mu, vr = params["c%d" % (i + 1)]
        s, bb = fold(g, bt, mu, vr)
        ws = np.asarray(w3) * s[None, None, None, :]          # scaled HWIO
        rows = slice((1 + i) * Cout, (2 + i) * Cout)
        w_pack[rows, 0:Cin] = ws[1, 1].T                      # centre tap (shared)
        t = 1 + i * 8
        for ky in range(3):
            for kx in range(3):
                if ky == 1 and kx == 1:
                    continue
                w_pack[rows, t * cin_p: t * cin_p + Cin] = ws[ky, kx].T
                t += 1
        b_pack[rows, 0] = bb

    # imagepool 1x1 conv (pooled inside the kernel after the shared matmul)
    wp, g, bt, mu, vr = params["imagepool"]
    s, bb = fold(g, bt, mu, vr)
    rows = slice(n_conv_branch * Cout, n_branch * Cout)
    w_pack[rows, 0:Cin] = (np.asarray(wp) * s[None, :]).T
    b_pack[rows, 0] = bb

    kernel = functools.partial(_aspp_fused_kernel, W=W, offsets=tuple(offsets),
                               cout=Cout, n_conv_branch=n_conv_branch)

    # Single invocation, no grid: all operands + output (< 0.5 MiB) sit in VMEM.
    out = pl.pallas_call(
        kernel,
        out_shape=jax.ShapeDtypeStruct((N, n_branch * Cout, HW), jnp.float32),
    )(xflat, jnp.asarray(w_pack), jnp.asarray(masks), jnp.asarray(b_pack))

    # already channel-major and lane-dense -> plain reshape to NCHW, no permute
    return out.reshape(N, n_branch * Cout, H, W)


# ---------------------------------------------------------------------------
# Deterministic parameter init (conv weights + raw eval-mode BatchNorm stats)
# ---------------------------------------------------------------------------
def init_params(key, in_ch, out_ch, rates):
    n_branches = 2 + len(rates)
    keys = iter(jax.random.split(key, n_branches * 5))

    def bn_params():
        gamma = jax.random.uniform(next(keys), (out_ch,), minval=0.5, maxval=1.5)
        beta = jax.random.normal(next(keys), (out_ch,)) * 0.1
        mean = jax.random.normal(next(keys), (out_ch,)) * 0.1
        var = jax.random.uniform(next(keys), (out_ch,), minval=0.5, maxval=1.5)
        return gamma, beta, mean, var

    params = {}
    w0 = jax.random.normal(next(keys), (in_ch, out_ch)) * 0.1
    params["c0"] = (w0,) + bn_params()
    for i, _ in enumerate(rates):
        w = jax.random.normal(next(keys), (3, 3, in_ch, out_ch)) * 0.1   # HWIO
        params["c%d" % (i + 1)] = (w,) + bn_params()
    wp = jax.random.normal(next(keys), (in_ch, out_ch)) * 0.1
    params["imagepool"] = (wp,) + bn_params()
    return params


# ---------------------------------------------------------------------------
# Pure-JAX reference with UNFOLDED BatchNorm (validates the BN fold too)
# ---------------------------------------------------------------------------
def aspp_reference(x_nchw, params, rates, eps=1e-5):
    x = jnp.transpose(x_nchw, (0, 2, 3, 1)).astype(jnp.float32)   # NHWC
    N, H, W, Cin = x.shape

    def bn_relu(y, g, b, m, v):
        return jnp.maximum((y - m) * (g / jnp.sqrt(v + eps)) + b, 0.0)

    outs = []
    w0, g, b, m, v = params["c0"]
    outs.append(bn_relu(jnp.einsum("nhwc,co->nhwo", x, w0), g, b, m, v))
    for i, r in enumerate(rates):
        w, g, b, m, v = params["c%d" % (i + 1)]
        y = lax.conv_general_dilated(
            x, w, window_strides=(1, 1), padding=[(r, r), (r, r)],
            rhs_dilation=(r, r), dimension_numbers=("NHWC", "HWIO", "NHWC"))
        outs.append(bn_relu(y, g, b, m, v))
    wp, g, b, m, v = params["imagepool"]
    pooled = jnp.mean(x, axis=(1, 2))
    h = bn_relu(pooled @ wp, g, b, m, v)
    outs.append(jnp.broadcast_to(h[:, None, None, :], (N, H, W, h.shape[-1])))
    y = jnp.concatenate(outs, axis=-1)
    return jnp.transpose(y, (0, 3, 1, 2))


if __name__ == "__main__":
    in_ch, out_ch = 4, 8
    rates = (2, 4, 6)
    N, H, W = 2, 16, 16

    key = jax.random.PRNGKey(0)
    kx, kp = jax.random.split(key)
    x = jax.random.normal(kx, (N, in_ch, H, W), dtype=jnp.float32)
    params = init_params(kp, in_ch, out_ch, rates)

    out = jax.block_until_ready(aspp_forward(x, params, rates))
    ref = jax.block_until_ready(aspp_reference(x, params, rates))

    assert out.shape == (N, out_ch * (2 + len(rates)), H, W), out.shape
    np.testing.assert_allclose(np.asarray(out), np.asarray(ref),
                               rtol=1e-3, atol=1e-3)
    print("KERNEL_OK")
</pallas_src>

<mosaic_0001>
module attributes {stable_mosaic.version = 11 : i64} {
  func.func @_aspp_fused_kernel(%arg0: memref<2x8x256xf32, #tpu.memory_space<vmem>>, %arg1: memref<40x200xf32, #tpu.memory_space<vmem>>, %arg2: memref<25x1x256xf32, #tpu.memory_space<vmem>>, %arg3: memref<40x1xf32, #tpu.memory_space<vmem>>, %arg4: memref<2x40x256xf32, #tpu.memory_space<vmem>>) attributes {dimension_semantics = [], scalar_prefetch = 0 : i64, scratch_operands = 0 : i64, tpu.core_type = #tpu.core_type<tc>} {
    %c0 = arith.constant 0 : index
    %c0_0 = arith.constant 0 : index
    %0 = vector.load %arg1[%c0, %c0_0] : memref<40x200xf32, #tpu.memory_space<vmem>>, vector<40x200xf32>
    %c0_1 = arith.constant 0 : index
    %c0_2 = arith.constant 0 : index
    %1 = vector.load %arg3[%c0_1, %c0_2] : memref<40x1xf32, #tpu.memory_space<vmem>>, vector<40x1xf32>
    %c0_3 = arith.constant 0 : index
    %c0_4 = arith.constant 0 : index
    %c0_5 = arith.constant 0 : index
    %2 = vector.load %arg0[%c0_3, %c0_4, %c0_5] : memref<2x8x256xf32, #tpu.memory_space<vmem>>, vector<1x8x256xf32>
    %3 = vector.shape_cast %2 : vector<1x8x256xf32> to vector<8x256xf32>
    %c34_i32 = arith.constant 34 : i32
    %4 = tpu.dynamic_rotate %3 by %c34_i32 dim 1 : vector<8x256xf32>, i32 -> vector<8x256xf32>
    %c1 = arith.constant 1 : index
    %c0_6 = arith.constant 0 : index
    %c0_7 = arith.constant 0 : index
    %5 = vector.load %arg2[%c1, %c0_6, %c0_7] : memref<25x1x256xf32, #tpu.memory_space<vmem>>, vector<1x1x256xf32>
    %6 = vector.shape_cast %5 : vector<1x1x256xf32> to vector<1x256xf32>
    %7 = vector.broadcast %6 : vector<1x256xf32> to vector<8x256xf32>
    %8 = arith.mulf %4, %7 : vector<8x256xf32>
    %c32_i32 = arith.constant 32 : i32
    %9 = tpu.dynamic_rotate %3 by %c32_i32 dim 1 : vector<8x256xf32>, i32 -> vector<8x256xf32>
    %c2 = arith.constant 2 : index
    %c0_8 = arith.constant 0 : index
    %c0_9 = arith.constant 0 : index
    %10 = vector.load %arg2[%c2, %c0_8, %c0_9] : memref<25x1x256xf32, #tpu.memory_space<vmem>>, vector<1x1x256xf32>
    %11 = vector.shape_cast %10 : vector<1x1x256xf32> to vector<1x256xf32>
    %12 = vector.broadcast %11 : vector<1x256xf32> to vector<8x256xf32>
    %13 = arith.mulf %9, %12 : vector<8x256xf32>
    %c30_i32 = arith.constant 30 : i32
    %14 = tpu.dynamic_rotate %3 by %c30_i32 dim 1 : vector<8x256xf32>, i32 -> vector<8x256xf32>
    %c3 = arith.constant 3 : index
    %c0_10 = arith.constant 0 : index
    %c0_11 = arith.constant 0 : index
    %15 = vector.load %arg2[%c3, %c0_10, %c0_11] : memref<25x1x256xf32, #tpu.memory_space<vmem>>, vector<1x1x256xf32>
    %16 = vector.shape_cast %15 : vector<1x1x256xf32> to vector<1x256xf32>
    %17 = vector.broadcast %16 : vector<1x256xf32> to vector<8x256xf32>
    %18 = arith.mulf %14, %17 : vector<8x256xf32>
    %c2_i32 = arith.constant 2 : i32
    %19 = tpu.dynamic_rotate %3 by %c2_i32 dim 1 : vector<8x256xf32>, i32 -> vector<8x256xf32>
    %c4 = arith.constant 4 : index
    %c0_12 = arith.constant 0 : index
    %c0_13 = arith.constant 0 : index
    %20 = vector.load %arg2[%c4, %c0_12, %c0_13] : memref<25x1x256xf32, #tpu.memory_space<vmem>>, vector<1x1x256xf32>
    %21 = vector.shape_cast %20 : vector<1x1x256xf32> to vector<1x256xf32>
    %22 = vector.broadcast %21 : vector<1x256xf32> to vector<8x256xf32>
    %23 = arith.mulf %19, %22 : vector<8x256xf32>
    %c254_i32 = arith.constant 254 : i32
    %24 = tpu.dynamic_rotate %3 by %c254_i32 dim 1 : vector<8x256xf32>, i32 -> vector<8x256xf32>
    %c5 = arith.constant 5 : index
    %c0_14 = arith.constant 0 : index
    %c0_15 = arith.constant 0 : index
    %25 = vector.load %arg2[%c5, %c0_14, %c0_15] : memref<25x1x256xf32, #tpu.memory_space<vmem>>, vector<1x1x256xf32>
    %26 = vector.shape_cast %25 : vector<1x1x256xf32> to vector<1x256xf32>
    %27 = vector.broadcast %26 : vector<1x256xf32> to vector<8x256xf32>
    %28 = arith.mulf %24, %27 : vector<8x256xf32>
    %c226_i32 = arith.constant 226 : i32
    %29 = tpu.dynamic_rotate %3 by %c226_i32 dim 1 : vector<8x256xf32>, i32 -> vector<8x256xf32>
    %c6 = arith.constant 6 : index
    %c0_16 = arith.constant 0 : index
    %c0_17 = arith.constant 0 : index
    %30 = vector.load %arg2[%c6, %c0_16, %c0_17] : memref<25x1x256xf32, #tpu.memory_space<vmem>>, vector<1x1x256xf32>
    %31 = vector.shape_cast %30 : vector<1x1x256xf32> to vector<1x256xf32>
    %32 = vector.broadcast %31 : vector<1x256xf32> to vector<8x256xf32>
    %33 = arith.mulf %29, %32 : vector<8x256xf32>
    %c224_i32 = arith.constant 224 : i32
    %34 = tpu.dynamic_rotate %3 by %c224_i32 dim 1 : vector<8x256xf32>, i32 -> vector<8x256xf32>
    %c7 = arith.constant 7 : index
    %c0_18 = arith.constant 0 : index
    %c0_19 = arith.constant 0 : index
    %35 = vector.load %arg2[%c7, %c0_18, %c0_19] : memref<25x1x256xf32, #tpu.memory_space<vmem>>, vector<1x1x256xf32>
    %36 = vector.shape_cast %35 : vector<1x1x256xf32> to vector<1x256xf32>
    %37 = vector.broadcast %36 : vector<1x256xf32> to vector<8x256xf32>
    %38 = arith.mulf %34, %37 : vector<8x256xf32>
    %c222_i32 = arith.constant 222 : i32
    %39 = tpu.dynamic_rotate %3 by %c222_i32 dim 1 : vector<8x256xf32>, i32 -> vector<8x256xf32>
    %c8 = arith.constant 8 : index
    %c0_20 = arith.constant 0 : index
    %c0_21 = arith.constant 0 : index
    %40 = vector.load %arg2[%c8, %c0_20, %c0_21] : memref<25x1x256xf32, #tpu.memory_space<vmem>>, vector<1x1x256xf32>
    %41 = vector.shape_cast %40 : vector<1x1x256xf32> to vector<1x256xf32>
    %42 = vector.broadcast %41 : vector<1x256xf32> to vector<8x256xf32>
    %43 = arith.mulf %39, %42 : vector<8x256xf32>
    %c68_i32 = arith.constant 68 : i32
    %44 = tpu.dynamic_rotate %3 by %c68_i32 dim 1 : vector<8x256xf32>, i32 -> vector<8x256xf32>
    %c9 = arith.constant 9 : index
    %c0_22 = arith.constant 0 : index
    %c0_23 = arith.constant 0 : index
    %45 = vector.load %arg2[%c9, %c0_22, %c0_23] : memref<25x1x256xf32, #tpu.memory_space<vmem>>, vector<1x1x256xf32>
    %46 = vector.shape_cast %45 : vector<1x1x256xf32> to vector<1x256xf32>
    %47 = vector.broadcast %46 : vector<1x256xf32> to vector<8x256xf32>
    %48 = arith.mulf %44, %47 : vector<8x256xf32>
    %c64_i32 = arith.constant 64 : i32
    %49 = tpu.dynamic_rotate %3 by %c64_i32 dim 1 : vector<8x256xf32>, i32 -> vector<8x256xf32>
    %c10 = arith.constant 10 : index
    %c0_24 = arith.constant 0 : index
    %c0_25 = arith.constant 0 : index
    %50 = vector.load %arg2[%c10, %c0_24, %c0_25] : memref<25x1x256xf32, #tpu.memory_space<vmem>>, vector<1x1x256xf32>
    %51 = vector.shape_cast %50 : vector<1x1x256xf32> to vector<1x256xf32>
    %52 = vector.broadcast %51 : vector<1x256xf32> to vector<8x256xf32>
    %53 = arith.mulf %49, %52 : vector<8x256xf32>
    %c60_i32 = arith.constant 60 : i32
    %54 = tpu.dynamic_rotate %3 by %c60_i32 dim 1 : vector<8x256xf32>, i32 -> vector<8x256xf32>
    %c11 = arith.constant 11 : index
    %c0_26 = arith.constant 0 : index
    %c0_27 = arith.constant 0 : index
    %55 = vector.load %arg2[%c11, %c0_26, %c0_27] : memref<25x1x256xf32, #tpu.memory_space<vmem>>, vector<1x1x256xf32>
    %56 = vector.shape_cast %55 : vector<1x1x256xf32> to vector<1x256xf32>
    %57 = vector.broadcast %56 : vector<1x256xf32> to vector<8x256xf32>
    %58 = arith.mulf %54, %57 : vector<8x256xf32>
    %c4_i32 = arith.constant 4 : i32
    %59 = tpu.dynamic_rotate %3 by %c4_i32 dim 1 : vector<8x256xf32>, i32 -> vector<8x256xf32>
    %c12 = arith.constant 12 : index
    %c0_28 = arith.constant 0 : index
    %c0_29 = arith.constant 0 : index
    %60 = vector.load %arg2[%c12, %c0_28, %c0_29] : memref<25x1x256xf32, #tpu.memory_space<vmem>>, vector<1x1x256xf32>
    %61 = vector.shape_cast %60 : vector<1x1x256xf32> to vector<1x256xf32>
    %62 = vector.broadcast %61 : vector<1x256xf32> to vector<8x256xf32>
    %63 = arith.mulf %59, %62 : vector<8x256xf32>
    %c252_i32 = arith.constant 252 : i32
    %64 = tpu.dynamic_rotate %3 by %c252_i32 dim 1 : vector<8x256xf32>, i32 -> vector<8x256xf32>
    %c13 = arith.constant 13 : index
    %c0_30 = arith.constant 0 : index
    %c0_31 = arith.constant 0 : index
    %65 = vector.load %arg2[%c13, %c0_30, %c0_31] : memref<25x1x256xf32, #tpu.memory_space<vmem>>, vector<1x1x256xf32>
    %66 = vector.shape_cast %65 : vector<1x1x256xf32> to vector<1x256xf32>
    %67 = vector.broadcast %66 : vector<1x256xf32> to vector<8x256xf32>
    %68 = arith.mulf %64, %67 : vector<8x256xf32>
    %c196_i32 = arith.constant 196 : i32
    %69 = tpu.dynamic_rotate %3 by %c196_i32 dim 1 : vector<8x256xf32>, i32 -> vector<8x256xf32>
    %c14 = arith.constant 14 : index
    %c0_32 = arith.constant 0 : index
    %c0_33 = arith.constant 0 : index
    %70 = vector.load %arg2[%c14, %c0_32, %c0_33] : memref<25x1x256xf32, #tpu.memory_space<vmem>>, vector<1x1x256xf32>
    %71 = vector.shape_cast %70 : vector<1x1x256xf32> to vector<1x256xf32>
    %72 = vector.broadcast %71 : vector<1x256xf32> to vector<8x256xf32>
    %73 = arith.mulf %69, %72 : vector<8x256xf32>
    %c192_i32 = arith.constant 192 : i32
    %74 = tpu.dynamic_rotate %3 by %c192_i32 dim 1 : vector<8x256xf32>, i32 -> vector<8x256xf32>
    %c15 = arith.constant 15 : index
    %c0_34 = arith.constant 0 : index
    %c0_35 = arith.constant 0 : index
    %75 = vector.load %arg2[%c15, %c0_34, %c0_35] : memref<25x1x256xf32, #tpu.memory_space<vmem>>, vector<1x1x256xf32>
    %76 = vector.shape_cast %75 : vector<1x1x256xf32> to vector<1x256xf32>
    %77 = vector.broadcast %76 : vector<1x256xf32> to vector<8x256xf32>
    %78 = arith.mulf %74, %77 : vector<8x256xf32>
    %c188_i32 = arith.constant 188 : i32
    %79 = tpu.dynamic_rotate %3 by %c188_i32 dim 1 : vector<8x256xf32>, i32 -> vector<8x256xf32>
    %c16 = arith.constant 16 : index
    %c0_36 = arith.constant 0 : index
    %c0_37 = arith.constant 0 : index
    %80 = vector.load %arg2[%c16, %c0_36, %c0_37] : memref<25x1x256xf32, #tpu.memory_space<vmem>>, vector<1x1x256xf32>
    %81 = vector.shape_cast %80 : vector<1x1x256xf32> to vector<1x256xf32>
    %82 = vector.broadcast %81 : vector<1x256xf32> to vector<8x256xf32>
    %83 = arith.mulf %79, %82 : vector<8x256xf32>
    %c102_i32 = arith.constant 102 : i32
    %84 = tpu.dynamic_rotate %3 by %c102_i32 dim 1 : vector<8x256xf32>, i32 -> vector<8x256xf32>
    %c17 = arith.constant 17 : index
    %c0_38 = arith.constant 0 : index
    %c0_39 = arith.constant 0 : index
    %85 = vector.load %arg2[%c17, %c0_38, %c0_39] : memref<25x1x256xf32, #tpu.memory_space<vmem>>, vector<1x1x256xf32>
    %86 = vector.shape_cast %85 : vector<1x1x256xf32> to vector<1x256xf32>
    %87 = vector.broadcast %86 : vector<1x256xf32> to vector<8x256xf32>
    %88 = arith.mulf %84, %87 : vector<8x256xf32>
    %c96_i32 = arith.constant 96 : i32
    %89 = tpu.dynamic_rotate %3 by %c96_i32 dim 1 : vector<8x256xf32>, i32 -> vector<8x256xf32>
    %c18 = arith.constant 18 : index
    %c0_40 = arith.constant 0 : index
    %c0_41 = arith.constant 0 : index
    %90 = vector.load %arg2[%c18, %c0_40, %c0_41] : memref<25x1x256xf32, #tpu.memory_space<vmem>>, vector<1x1x256xf32>
    %91 = vector.shape_cast %90 : vector<1x1x256xf32> to vector<1x256xf32>
    %92 = vector.broadcast %91 : vector<1x256xf32> to vector<8x256xf32>
    %93 = arith.mulf %89, %92 : vector<8x256xf32>
    %c90_i32 = arith.constant 90 : i32
    %94 = tpu.dynamic_rotate %3 by %c90_i32 dim 1 : vector<8x256xf32>, i32 -> vector<8x256xf32>
    %c19 = arith.constant 19 : index
    %c0_42 = arith.constant 0 : index
    %c0_43 = arith.constant 0 : index
    %95 = vector.load %arg2[%c19, %c0_42, %c0_43] : memref<25x1x256xf32, #tpu.memory_space<vmem>>, vector<1x1x256xf32>
    %96 = vector.shape_cast %95 : vector<1x1x256xf32> to vector<1x256xf32>
    %97 = vector.broadcast %96 : vector<1x256xf32> to vector<8x256xf32>
    %98 = arith.mulf %94, %97 : vector<8x256xf32>
    %c6_i32 = arith.constant 6 : i32
    %99 = tpu.dynamic_rotate %3 by %c6_i32 dim 1 : vector<8x256xf32>, i32 -> vector<8x256xf32>
    %c20 = arith.constant 20 : index
    %c0_44 = arith.constant 0 : index
    %c0_45 = arith.constant 0 : index
    %100 = vector.load %arg2[%c20, %c0_44, %c0_45] : memref<25x1x256xf32, #tpu.memory_space<vmem>>, vector<1x1x256xf32>
    %101 = vector.shape_cast %100 : vector<1x1x256xf32> to vector<1x256xf32>
    %102 = vector.broadcast %101 : vector<1x256xf32> to vector<8x256xf32>
    %103 = arith.mulf %99, %102 : vector<8x256xf32>
    %c250_i32 = arith.constant 250 : i32
    %104 = tpu.dynamic_rotate %3 by %c250_i32 dim 1 : vector<8x256xf32>, i32 -> vector<8x256xf32>
    %c21 = arith.constant 21 : index
    %c0_46 = arith.constant 0 : index
    %c0_47 = arith.constant 0 : index
    %105 = vector.load %arg2[%c21, %c0_46, %c0_47] : memref<25x1x256xf32, #tpu.memory_space<vmem>>, vector<1x1x256xf32>
    %106 = vector.shape_cast %105 : vector<1x1x256xf32> to vector<1x256xf32>
    %107 = vector.broadcast %106 : vector<1x256xf32> to vector<8x256xf32>
    %108 = arith.mulf %104, %107 : vector<8x256xf32>
    %c166_i32 = arith.constant 166 : i32
    %109 = tpu.dynamic_rotate %3 by %c166_i32 dim 1 : vector<8x256xf32>, i32 -> vector<8x256xf32>
    %c22 = arith.constant 22 : index
    %c0_48 = arith.constant 0 : index
    %c0_49 = arith.constant 0 : index
    %110 = vector.load %arg2[%c22, %c0_48, %c0_49] : memref<25x1x256xf32, #tpu.memory_space<vmem>>, vector<1x1x256xf32>
    %111 = vector.shape_cast %110 : vector<1x1x256xf32> to vector<1x256xf32>
    %112 = vector.broadcast %111 : vector<1x256xf32> to vector<8x256xf32>
    %113 = arith.mulf %109, %112 : vector<8x256xf32>
    %c160_i32 = arith.constant 160 : i32
    %114 = tpu.dynamic_rotate %3 by %c160_i32 dim 1 : vector<8x256xf32>, i32 -> vector<8x256xf32>
    %c23 = arith.constant 23 : index
    %c0_50 = arith.constant 0 : index
    %c0_51 = arith.constant 0 : index
    %115 = vector.load %arg2[%c23, %c0_50, %c0_51] : memref<25x1x256xf32, #tpu.memory_space<vmem>>, vector<1x1x256xf32>
    %116 = vector.shape_cast %115 : vector<1x1x256xf32> to vector<1x256xf32>
    %117 = vector.broadcast %116 : vector<1x256xf32> to vector<8x256xf32>
    %118 = arith.mulf %114, %117 : vector<8x256xf32>
    %c154_i32 = arith.constant 154 : i32
    %119 = tpu.dynamic_rotate %3 by %c154_i32 dim 1 : vector<8x256xf32>, i32 -> vector<8x256xf32>
    %c24 = arith.constant 24 : index
    %c0_52 = arith.constant 0 : index
    %c0_53 = arith.constant 0 : index
    %120 = vector.load %arg2[%c24, %c0_52, %c0_53] : memref<25x1x256xf32, #tpu.memory_space<vmem>>, vector<1x1x256xf32>
    %121 = vector.shape_cast %120 : vector<1x1x256xf32> to vector<1x256xf32>
    %122 = vector.broadcast %121 : vector<1x256xf32> to vector<8x256xf32>
    %123 = arith.mulf %119, %122 : vector<8x256xf32>
    %124 = tpu.concatenate %3, %8, %13, %18, %23, %28, %33, %38, %43, %48, %53, %58, %63, %68, %73, %78 in 0 : vector<8x256xf32>, vector<8x256xf32>, vector<8x256xf32>, vector<8x256xf32>, vector<8x256xf32>, vector<8x256xf32>, vector<8x256xf32>, vector<8x256xf32>, vector<8x256xf32>, vector<8x256xf32>, vector<8x256xf32>, vector<8x256xf32>, vector<8x256xf32>, vector<8x256xf32>, vector<8x256xf32>, vector<8x256xf32> -> vector<128x256xf32>
    %125 = tpu.concatenate %83, %88, %93, %98, %103, %108, %113, %118, %123 in 0 : vector<8x256xf32>, vector<8x256xf32>, vector<8x256xf32>, vector<8x256xf32>, vector<8x256xf32>, vector<8x256xf32>, vector<8x256xf32>, vector<8x256xf32>, vector<8x256xf32> -> vector<72x256xf32>
    %126 = tpu.concatenate %124, %125 in 0 : vector<128x256xf32>, vector<72x256xf32> -> vector<200x256xf32>
    %cst = arith.constant dense<0.000000e+00> : vector<40x256xf32>
    %127 = tpu.matmul %0, %126, %cst {dimension_numbers = #tpu.dot_dimension_numbers<[1], [0], [0], [1], [0, 0, 1, 1], [], []>} : vector<40x200xf32>, vector<200x256xf32>, vector<40x256xf32> -> vector<40x256xf32>
    %128 = vector.extract_strided_slice %127 {offsets = [0, 0], sizes = [32, 256], strides = [1, 1]} : vector<40x256xf32> to vector<32x256xf32>
    %129 = vector.extract_strided_slice %1 {offsets = [0, 0], sizes = [32, 1], strides = [1, 1]} : vector<40x1xf32> to vector<32x1xf32>
    %130 = vector.broadcast %129 : vector<32x1xf32> to vector<32x256xf32>
    %131 = arith.addf %128, %130 : vector<32x256xf32>
    %cst_54 = arith.constant 0.000000e+00 : f32
    %132 = vector.broadcast %cst_54 : f32 to vector<32x256xf32>
    %133 = arith.maximumf %131, %132 : vector<32x256xf32>
    %c0_55 = arith.constant 0 : index
    %c0_56 = arith.constant 0 : index
    %c0_57 = arith.constant 0 : index
    %134 = vector.load %arg4[%c0_55, %c0_56, %c0_57] : memref<2x40x256xf32, #tpu.memory_space<vmem>>, vector<1x32x256xf32>
    %135 = vector.shape_cast %134 : vector<1x32x256xf32> to vector<32x256xf32>
    %136 = vector.shape_cast %133 : vector<32x256xf32> to vector<1x32x256xf32>
    tpu.vector_store %arg4[%c0_55, %c0_56, %c0_57], %136 {strides = array<i32>} : memref<2x40x256xf32, #tpu.memory_space<vmem>>, vector<1x32x256xf32>,
    %137 = vector.extract_strided_slice %127 {offsets = [32, 0], sizes = [8, 256], strides = [1, 1]} : vector<40x256xf32> to vector<8x256xf32>
    %cst_58 = arith.constant dense<0.000000e+00> : vector<8xf32>
    %138 = vector.multi_reduction <add>, %137, %cst_58 [1] : vector<8x256xf32> to vector<8xf32>
    %139 = vector.shape_cast %138 : vector<8xf32> to vector<8x1xf32>
    %cst_59 = arith.constant 3.906250e-03 : f32
    %140 = vector.broadcast %cst_59 : f32 to vector<8x1xf32>
    %141 = arith.mulf %139, %140 : vector<8x1xf32>
    %142 = vector.extract_strided_slice %1 {offsets = [32, 0], sizes = [8, 1], strides = [1, 1]} : vector<40x1xf32> to vector<8x1xf32>
    %143 = arith.addf %141, %142 : vector<8x1xf32>
    %cst_60 = arith.constant 0.000000e+00 : f32
    %144 = vector.broadcast %cst_60 : f32 to vector<8x1xf32>
    %145 = arith.maximumf %143, %144 : vector<8x1xf32>
    %146 = vector.shape_cast %145 : vector<8x1xf32> to vector<8x1xf32>
    %147 = vector.broadcast %146 : vector<8x1xf32> to vector<8x256xf32>
    %c0_61 = arith.constant 0 : index
    %c32 = arith.constant 32 : index
    %c0_62 = arith.constant 0 : index
    %148 = vector.load %arg4[%c0_61, %c32, %c0_62] : memref<2x40x256xf32, #tpu.memory_space<vmem>>, vector<1x8x256xf32>
    %149 = vector.shape_cast %148 : vector<1x8x256xf32> to vector<8x256xf32>
    %150 = vector.shape_cast %147 : vector<8x256xf32> to vector<1x8x256xf32>
    tpu.vector_store %arg4[%c0_61, %c32, %c0_62], %150 {strides = array<i32>} : memref<2x40x256xf32, #tpu.memory_space<vmem>>, vector<1x8x256xf32>,
    %c1_63 = arith.constant 1 : index
    %c0_64 = arith.constant 0 : index
    %c0_65 = arith.constant 0 : index
    %151 = vector.load %arg0[%c1_63, %c0_64, %c0_65] : memref<2x8x256xf32, #tpu.memory_space<vmem>>, vector<1x8x256xf32>
    %152 = vector.shape_cast %151 : vector<1x8x256xf32> to vector<8x256xf32>
    %c34_i32_66 = arith.constant 34 : i32
    %153 = tpu.dynamic_rotate %152 by %c34_i32_66 dim 1 : vector<8x256xf32>, i32 -> vector<8x256xf32>
    %c1_67 = arith.constant 1 : index
    %c0_68 = arith.constant 0 : index
    %c0_69 = arith.constant 0 : index
    %154 = vector.load %arg2[%c1_67, %c0_68, %c0_69] : memref<25x1x256xf32, #tpu.memory_space<vmem>>, vector<1x1x256xf32>
    %155 = vector.shape_cast %154 : vector<1x1x256xf32> to vector<1x256xf32>
    %156 = vector.broadcast %155 : vector<1x256xf32> to vector<8x256xf32>
    %157 = arith.mulf %153, %156 : vector<8x256xf32>
    %c32_i32_70 = arith.constant 32 : i32
    %158 = tpu.dynamic_rotate %152 by %c32_i32_70 dim 1 : vector<8x256xf32>, i32 -> vector<8x256xf32>
    %c2_71 = arith.constant 2 : index
    %c0_72 = arith.constant 0 : index
    %c0_73 = arith.constant 0 : index
    %159 = vector.load %arg2[%c2_71, %c0_72, %c0_73] : memref<25x1x256xf32, #tpu.memory_space<vmem>>, vector<1x1x256xf32>
    %160 = vector.shape_cast %159 : vector<1x1x256xf32> to vector<1x256xf32>
    %161 = vector.broadcast %160 : vector<1x256xf32> to vector<8x256xf32>
    %162 = arith.mulf %158, %161 : vector<8x256xf32>
    %c30_i32_74 = arith.constant 30 : i32
    %163 = tpu.dynamic_rotate %152 by %c30_i32_74 dim 1 : vector<8x256xf32>, i32 -> vector<8x256xf32>
    %c3_75 = arith.constant 3 : index
    %c0_76 = arith.constant 0 : index
    %c0_77 = arith.constant 0 : index
    %164 = vector.load %arg2[%c3_75, %c0_76, %c0_77] : memref<25x1x256xf32, #tpu.memory_space<vmem>>, vector<1x1x256xf32>
    %165 = vector.shape_cast %164 : vector<1x1x256xf32> to vector<1x256xf32>
    %166 = vector.broadcast %165 : vector<1x256xf32> to vector<8x256xf32>
    %167 = arith.mulf %163, %166 : vector<8x256xf32>
    %c2_i32_78 = arith.constant 2 : i32
    %168 = tpu.dynamic_rotate %152 by %c2_i32_78 dim 1 : vector<8x256xf32>, i32 -> vector<8x256xf32>
    %c4_79 = arith.constant 4 : index
    %c0_80 = arith.constant 0 : index
    %c0_81 = arith.constant 0 : index
    %169 = vector.load %arg2[%c4_79, %c0_80, %c0_81] : memref<25x1x256xf32, #tpu.memory_space<vmem>>, vector<1x1x256xf32>
    %170 = vector.shape_cast %169 : vector<1x1x256xf32> to vector<1x256xf32>
    %171 = vector.broadcast %170 : vector<1x256xf32> to vector<8x256xf32>
    %172 = arith.mulf %168, %171 : vector<8x256xf32>
    %c254_i32_82 = arith.constant 254 : i32
    %173 = tpu.dynamic_rotate %152 by %c254_i32_82 dim 1 : vector<8x256xf32>, i32 -> vector<8x256xf32>
    %c5_83 = arith.constant 5 : index
    %c0_84 = arith.constant 0 : index
    %c0_85 = arith.constant 0 : index
    %174 = vector.load %arg2[%c5_83, %c0_84, %c0_85] : memref<25x1x256xf32, #tpu.memory_space<vmem>>, vector<1x1x256xf32>
    %175 = vector.shape_cast %174 : vector<1x1x256xf32> to vector<1x256xf32>
    %176 = vector.broadcast %175 : vector<1x256xf32> to vector<8x256xf32>
    %177 = arith.mulf %173, %176 : vector<8x256xf32>
    %c226_i32_86 = arith.constant 226 : i32
    %178 = tpu.dynamic_rotate %152 by %c226_i32_86 dim 1 : vector<8x256xf32>, i32 -> vector<8x256xf32>
    %c6_87 = arith.constant 6 : index
    %c0_88 = arith.constant 0 : index
    %c0_89 = arith.constant 0 : index
    %179 = vector.load %arg2[%c6_87, %c0_88, %c0_89] : memref<25x1x256xf32, #tpu.memory_space<vmem>>, vector<1x1x256xf32>
    %180 = vector.shape_cast %179 : vector<1x1x256xf32> to vector<1x256xf32>
    %181 = vector.broadcast %180 : vector<1x256xf32> to vector<8x256xf32>
    %182 = arith.mulf %178, %181 : vector<8x256xf32>
    %c224_i32_90 = arith.constant 224 : i32
    %183 = tpu.dynamic_rotate %152 by %c224_i32_90 dim 1 : vector<8x256xf32>, i32 -> vector<8x256xf32>
    %c7_91 = arith.constant 7 : index
    %c0_92 = arith.constant 0 : index
    %c0_93 = arith.constant 0 : index
    %184 = vector.load %arg2[%c7_91, %c0_92, %c0_93] : memref<25x1x256xf32, #tpu.memory_space<vmem>>, vector<1x1x256xf32>
    %185 = vector.shape_cast %184 : vector<1x1x256xf32> to vector<1x256xf32>
    %186 = vector.broadcast %185 : vector<1x256xf32> to vector<8x256xf32>
    %187 = arith.mulf %183, %186 : vector<8x256xf32>
    %c222_i32_94 = arith.constant 222 : i32
    %188 = tpu.dynamic_rotate %152 by %c222_i32_94 dim 1 : vector<8x256xf32>, i32 -> vector<8x256xf32>
    %c8_95 = arith.constant 8 : index
    %c0_96 = arith.constant 0 : index
    %c0_97 = arith.constant 0 : index
    %189 = vector.load %arg2[%c8_95, %c0_96, %c0_97] : memref<25x1x256xf32, #tpu.memory_space<vmem>>, vector<1x1x256xf32>
    %190 = vector.shape_cast %189 : vector<1x1x256xf32> to vector<1x256xf32>
    %191 = vector.broadcast %190 : vector<1x256xf32> to vector<8x256xf32>
    %192 = arith.mulf %188, %191 : vector<8x256xf32>
    %c68_i32_98 = arith.constant 68 : i32
    %193 = tpu.dynamic_rotate %152 by %c68_i32_98 dim 1 : vector<8x256xf32>, i32 -> vector<8x256xf32>
    %c9_99 = arith.constant 9 : index
    %c0_100 = arith.constant 0 : index
    %c0_101 = arith.constant 0 : index
    %194 = vector.load %arg2[%c9_99, %c0_100, %c0_101] : memref<25x1x256xf32, #tpu.memory_space<vmem>>, vector<1x1x256xf32>
    %195 = vector.shape_cast %194 : vector<1x1x256xf32> to vector<1x256xf32>
    %196 = vector.broadcast %195 : vector<1x256xf32> to vector<8x256xf32>
    %197 = arith.mulf %193, %196 : vector<8x256xf32>
    %c64_i32_102 = arith.constant 64 : i32
    %198 = tpu.dynamic_rotate %152 by %c64_i32_102 dim 1 : vector<8x256xf32>, i32 -> vector<8x256xf32>
    %c10_103 = arith.constant 10 : index
    %c0_104 = arith.constant 0 : index
    %c0_105 = arith.constant 0 : index
    %199 = vector.load %arg2[%c10_103, %c0_104, %c0_105] : memref<25x1x256xf32, #tpu.memory_space<vmem>>, vector<1x1x256xf32>
    %200 = vector.shape_cast %199 : vector<1x1x256xf32> to vector<1x256xf32>
    %201 = vector.broadcast %200 : vector<1x256xf32> to vector<8x256xf32>
    %202 = arith.mulf %198, %201 : vector<8x256xf32>
    %c60_i32_106 = arith.constant 60 : i32
    %203 = tpu.dynamic_rotate %152 by %c60_i32_106 dim 1 : vector<8x256xf32>, i32 -> vector<8x256xf32>
    %c11_107 = arith.constant 11 : index
    %c0_108 = arith.constant 0 : index
    %c0_109 = arith.constant 0 : index
    %204 = vector.load %arg2[%c11_107, %c0_108, %c0_109] : memref<25x1x256xf32, #tpu.memory_space<vmem>>, vector<1x1x256xf32>
    %205 = vector.shape_cast %204 : vector<1x1x256xf32> to vector<1x256xf32>
    %206 = vector.broadcast %205 : vector<1x256xf32> to vector<8x256xf32>
    %207 = arith.mulf %203, %206 : vector<8x256xf32>
    %c4_i32_110 = arith.constant 4 : i32
    %208 = tpu.dynamic_rotate %152 by %c4_i32_110 dim 1 : vector<8x256xf32>, i32 -> vector<8x256xf32>
    %c12_111 = arith.constant 12 : index
    %c0_112 = arith.constant 0 : index
    %c0_113 = arith.constant 0 : index
    %209 = vector.load %arg2[%c12_111, %c0_112, %c0_113] : memref<25x1x256xf32, #tpu.memory_space<vmem>>, vector<1x1x256xf32>
    %210 = vector.shape_cast %209 : vector<1x1x256xf32> to vector<1x256xf32>
    %211 = vector.broadcast %210 : vector<1x256xf32> to vector<8x256xf32>
    %212 = arith.mulf %208, %211 : vector<8x256xf32>
    %c252_i32_114 = arith.constant 252 : i32
    %213 = tpu.dynamic_rotate %152 by %c252_i32_114 dim 1 : vector<8x256xf32>, i32 -> vector<8x256xf32>
    %c13_115 = arith.constant 13 : index
    %c0_116 = arith.constant 0 : index
    %c0_117 = arith.constant 0 : index
    %214 = vector.load %arg2[%c13_115, %c0_116, %c0_117] : memref<25x1x256xf32, #tpu.memory_space<vmem>>, vector<1x1x256xf32>
    %215 = vector.shape_cast %214 : vector<1x1x256xf32> to vector<1x256xf32>
    %216 = vector.broadcast %215 : vector<1x256xf32> to vector<8x256xf32>
    %217 = arith.mulf %213, %216 : vector<8x256xf32>
    %c196_i32_118 = arith.constant 196 : i32
    %218 = tpu.dynamic_rotate %152 by %c196_i32_118 dim 1 : vector<8x256xf32>, i32 -> vector<8x256xf32>
    %c14_119 = arith.constant 14 : index
    %c0_120 = arith.constant 0 : index
    %c0_121 = arith.constant 0 : index
    %219 = vector.load %arg2[%c14_119, %c0_120, %c0_121] : memref<25x1x256xf32, #tpu.memory_space<vmem>>, vector<1x1x256xf32>
    %220 = vector.shape_cast %219 : vector<1x1x256xf32> to vector<1x256xf32>
    %221 = vector.broadcast %220 : vector<1x256xf32> to vector<8x256xf32>
    %222 = arith.mulf %218, %221 : vector<8x256xf32>
    %c192_i32_122 = arith.constant 192 : i32
    %223 = tpu.dynamic_rotate %152 by %c192_i32_122 dim 1 : vector<8x256xf32>, i32 -> vector<8x256xf32>
    %c15_123 = arith.constant 15 : index
    %c0_124 = arith.constant 0 : index
    %c0_125 = arith.constant 0 : index
    %224 = vector.load %arg2[%c15_123, %c0_124, %c0_125] : memref<25x1x256xf32, #tpu.memory_space<vmem>>, vector<1x1x256xf32>
    %225 = vector.shape_cast %224 : vector<1x1x256xf32> to vector<1x256xf32>
    %226 = vector.broadcast %225 : vector<1x256xf32> to vector<8x256xf32>
    %227 = arith.mulf %223, %226 : vector<8x256xf32>
    %c188_i32_126 = arith.constant 188 : i32
    %228 = tpu.dynamic_rotate %152 by %c188_i32_126 dim 1 : vector<8x256xf32>, i32 -> vector<8x256xf32>
    %c16_127 = arith.constant 16 : index
    %c0_128 = arith.constant 0 : index
    %c0_129 = arith.constant 0 : index
    %229 = vector.load %arg2[%c16_127, %c0_128, %c0_129] : memref<25x1x256xf32, #tpu.memory_space<vmem>>, vector<1x1x256xf32>
    %230 = vector.shape_cast %229 : vector<1x1x256xf32> to vector<1x256xf32>
    %231 = vector.broadcast %230 : vector<1x256xf32> to vector<8x256xf32>
    %232 = arith.mulf %228, %231 : vector<8x256xf32>
    %c102_i32_130 = arith.constant 102 : i32
    %233 = tpu.dynamic_rotate %152 by %c102_i32_130 dim 1 : vector<8x256xf32>, i32 -> vector<8x256xf32>
    %c17_131 = arith.constant 17 : index
    %c0_132 = arith.constant 0 : index
    %c0_133 = arith.constant 0 : index
    %234 = vector.load %arg2[%c17_131, %c0_132, %c0_133] : memref<25x1x256xf32, #tpu.memory_space<vmem>>, vector<1x1x256xf32>
    %235 = vector.shape_cast %234 : vector<1x1x256xf32> to vector<1x256xf32>
    %236 = vector.broadcast %235 : vector<1x256xf32> to vector<8x256xf32>
    %237 = arith.mulf %233, %236 : vector<8x256xf32>
    %c96_i32_134 = arith.constant 96 : i32
    %238 = tpu.dynamic_rotate %152 by %c96_i32_134 dim 1 : vector<8x256xf32>, i32 -> vector<8x256xf32>
    %c18_135 = arith.constant 18 : index
    %c0_136 = arith.constant 0 : index
    %c0_137 = arith.constant 0 : index
    %239 = vector.load %arg2[%c18_135, %c0_136, %c0_137] : memref<25x1x256xf32, #tpu.memory_space<vmem>>, vector<1x1x256xf32>
    %240 = vector.shape_cast %239 : vector<1x1x256xf32> to vector<1x256xf32>
    %241 = vector.broadcast %240 : vector<1x256xf32> to vector<8x256xf32>
    %242 = arith.mulf %238, %241 : vector<8x256xf32>
    %c90_i32_138 = arith.constant 90 : i32
    %243 = tpu.dynamic_rotate %152 by %c90_i32_138 dim 1 : vector<8x256xf32>, i32 -> vector<8x256xf32>
    %c19_139 = arith.constant 19 : index
    %c0_140 = arith.constant 0 : index
    %c0_141 = arith.constant 0 : index
    %244 = vector.load %arg2[%c19_139, %c0_140, %c0_141] : memref<25x1x256xf32, #tpu.memory_space<vmem>>, vector<1x1x256xf32>
    %245 = vector.shape_cast %244 : vector<1x1x256xf32> to vector<1x256xf32>
    %246 = vector.broadcast %245 : vector<1x256xf32> to vector<8x256xf32>
    %247 = arith.mulf %243, %246 : vector<8x256xf32>
    %c6_i32_142 = arith.constant 6 : i32
    %248 = tpu.dynamic_rotate %152 by %c6_i32_142 dim 1 : vector<8x256xf32>, i32 -> vector<8x256xf32>
    %c20_143 = arith.constant 20 : index
    %c0_144 = arith.constant 0 : index
    %c0_145 = arith.constant 0 : index
    %249 = vector.load %arg2[%c20_143, %c0_144, %c0_145] : memref<25x1x256xf32, #tpu.memory_space<vmem>>, vector<1x1x256xf32>
    %250 = vector.shape_cast %249 : vector<1x1x256xf32> to vector<1x256xf32>
    %251 = vector.broadcast %250 : vector<1x256xf32> to vector<8x256xf32>
    %252 = arith.mulf %248, %251 : vector<8x256xf32>
    %c250_i32_146 = arith.constant 250 : i32
    %253 = tpu.dynamic_rotate %152 by %c250_i32_146 dim 1 : vector<8x256xf32>, i32 -> vector<8x256xf32>
    %c21_147 = arith.constant 21 : index
    %c0_148 = arith.constant 0 : index
    %c0_149 = arith.constant 0 : index
    %254 = vector.load %arg2[%c21_147, %c0_148, %c0_149] : memref<25x1x256xf32, #tpu.memory_space<vmem>>, vector<1x1x256xf32>
    %255 = vector.shape_cast %254 : vector<1x1x256xf32> to vector<1x256xf32>
    %256 = vector.broadcast %255 : vector<1x256xf32> to vector<8x256xf32>
    %257 = arith.mulf %253, %256 : vector<8x256xf32>
    %c166_i32_150 = arith.constant 166 : i32
    %258 = tpu.dynamic_rotate %152 by %c166_i32_150 dim 1 : vector<8x256xf32>, i32 -> vector<8x256xf32>
    %c22_151 = arith.constant 22 : index
    %c0_152 = arith.constant 0 : index
    %c0_153 = arith.constant 0 : index
    %259 = vector.load %arg2[%c22_151, %c0_152, %c0_153] : memref<25x1x256xf32, #tpu.memory_space<vmem>>, vector<1x1x256xf32>
    %260 = vector.shape_cast %259 : vector<1x1x256xf32> to vector<1x256xf32>
    %261 = vector.broadcast %260 : vector<1x256xf32> to vector<8x256xf32>
    %262 = arith.mulf %258, %261 : vector<8x256xf32>
    %c160_i32_154 = arith.constant 160 : i32
    %263 = tpu.dynamic_rotate %152 by %c160_i32_154 dim 1 : vector<8x256xf32>, i32 -> vector<8x256xf32>
    %c23_155 = arith.constant 23 : index
    %c0_156 = arith.constant 0 : index
    %c0_157 = arith.constant 0 : index
    %264 = vector.load %arg2[%c23_155, %c0_156, %c0_157] : memref<25x1x256xf32, #tpu.memory_space<vmem>>, vector<1x1x256xf32>
    %265 = vector.shape_cast %264 : vector<1x1x256xf32> to vector<1x256xf32>
    %266 = vector.broadcast %265 : vector<1x256xf32> to vector<8x256xf32>
    %267 = arith.mulf %263, %266 : vector<8x256xf32>
    %c154_i32_158 = arith.constant 154 : i32
    %268 = tpu.dynamic_rotate %152 by %c154_i32_158 dim 1 : vector<8x256xf32>, i32 -> vector<8x256xf32>
    %c24_159 = arith.constant 24 : index
    %c0_160 = arith.constant 0 : index
    %c0_161 = arith.constant 0 : index
    %269 = vector.load %arg2[%c24_159, %c0_160, %c0_161] : memref<25x1x256xf32, #tpu.memory_space<vmem>>, vector<1x1x256xf32>
    %270 = vector.shape_cast %269 : vector<1x1x256xf32> to vector<1x256xf32>
    %271 = vector.broadcast %270 : vector<1x256xf32> to vector<8x256xf32>
    %272 = arith.mulf %268, %271 : vector<8x256xf32>
    %273 = tpu.concatenate %152, %157, %162, %167, %172, %177, %182, %187, %192, %197, %202, %207, %212, %217, %222, %227 in 0 : vector<8x256xf32>, vector<8x256xf32>, vector<8x256xf32>, vector<8x256xf32>, vector<8x256xf32>, vector<8x256xf32>, vector<8x256xf32>, vector<8x256xf32>, vector<8x256xf32>, vector<8x256xf32>, vector<8x256xf32>, vector<8x256xf32>, vector<8x256xf32>, vector<8x256xf32>, vector<8x256xf32>, vector<8x256xf32> -> vector<128x256xf32>
    %274 = tpu.concatenate %232, %237, %242, %247, %252, %257, %262, %267, %272 in 0 : vector<8x256xf32>, vector<8x256xf32>, vector<8x256xf32>, vector<8x256xf32>, vector<8x256xf32>, vector<8x256xf32>, vector<8x256xf32>, vector<8x256xf32>, vector<8x256xf32> -> vector<72x256xf32>
    %275 = tpu.concatenate %273, %274 in 0 : vector<128x256xf32>, vector<72x256xf32> -> vector<200x256xf32>
    %cst_162 = arith.constant dense<0.000000e+00> : vector<40x256xf32>
    %276 = tpu.matmul %0, %275, %cst_162 {dimension_numbers = #tpu.dot_dimension_numbers<[1], [0], [0], [1], [0, 0, 1, 1], [], []>} : vector<40x200xf32>, vector<200x256xf32>, vector<40x256xf32> -> vector<40x256xf32>
    %277 = vector.extract_strided_slice %276 {offsets = [0, 0], sizes = [32, 256], strides = [1, 1]} : vector<40x256xf32> to vector<32x256xf32>
    %278 = vector.extract_strided_slice %1 {offsets = [0, 0], sizes = [32, 1], strides = [1, 1]} : vector<40x1xf32> to vector<32x1xf32>
    %279 = vector.broadcast %278 : vector<32x1xf32> to vector<32x256xf32>
    %280 = arith.addf %277, %279 : vector<32x256xf32>
    %cst_163 = arith.constant 0.000000e+00 : f32
    %281 = vector.broadcast %cst_163 : f32 to vector<32x256xf32>
    %282 = arith.maximumf %280, %281 : vector<32x256xf32>
    %c1_164 = arith.constant 1 : index
    %c0_165 = arith.constant 0 : index
    %c0_166 = arith.constant 0 : index
    %283 = vector.load %arg4[%c1_164, %c0_165, %c0_166] : memref<2x40x256xf32, #tpu.memory_space<vmem>>, vector<1x32x256xf32>
    %284 = vector.shape_cast %283 : vector<1x32x256xf32> to vector<32x256xf32>
    %285 = vector.shape_cast %282 : vector<32x256xf32> to vector<1x32x256xf32>
    tpu.vector_store %arg4[%c1_164, %c0_165, %c0_166], %285 {strides = array<i32>} : memref<2x40x256xf32, #tpu.memory_space<vmem>>, vector<1x32x256xf32>,
    %286 = vector.extract_strided_slice %276 {offsets = [32, 0], sizes = [8, 256], strides = [1, 1]} : vector<40x256xf32> to vector<8x256xf32>
    %cst_167 = arith.constant dense<0.000000e+00> : vector<8xf32>
    %287 = vector.multi_reduction <add>, %286, %cst_167 [1] : vector<8x256xf32> to vector<8xf32>
    %288 = vector.shape_cast %287 : vector<8xf32> to vector<8x1xf32>
    %cst_168 = arith.constant 3.906250e-03 : f32
    %289 = vector.broadcast %cst_168 : f32 to vector<8x1xf32>
    %290 = arith.mulf %288, %289 : vector<8x1xf32>
    %291 = vector.extract_strided_slice %1 {offsets = [32, 0], sizes = [8, 1], strides = [1, 1]} : vector<40x1xf32> to vector<8x1xf32>
    %292 = arith.addf %290, %291 : vector<8x1xf32>
    %cst_169 = arith.constant 0.000000e+00 : f32
    %293 = vector.broadcast %cst_169 : f32 to vector<8x1xf32>
    %294 = arith.maximumf %292, %293 : vector<8x1xf32>
    %295 = vector.shape_cast %294 : vector<8x1xf32> to vector<8x1xf32>
    %296 = vector.broadcast %295 : vector<8x1xf32> to vector<8x256xf32>
    %c1_170 = arith.constant 1 : index
    %c32_171 = arith.constant 32 : index
    %c0_172 = arith.constant 0 : index
    %297 = vector.load %arg4[%c1_170, %c32_171, %c0_172] : memref<2x40x256xf32, #tpu.memory_space<vmem>>, vector<1x8x256xf32>
    %298 = vector.shape_cast %297 : vector<1x8x256xf32> to vector<8x256xf32>
    %299 = vector.shape_cast %296 : vector<8x256xf32> to vector<1x8x256xf32>
    tpu.vector_store %arg4[%c1_170, %c32_171, %c0_172], %299 {strides = array<i32>} : memref<2x40x256xf32, #tpu.memory_space<vmem>>, vector<1x8x256xf32>,
    return
  }
}

</mosaic_0001>

<bundles_post_ra>
// kernel: tpu_custom_call.1
= control target key start
LH: loop header
LB: loop body
LE: loop exit
PB: predicated region body
PF: predicated region fallthrough
CT: control target
= control target key end

     0   :  { %9 = vsyncpa [#allocation3], 0  ;;  %s1882_s0 = inlined_call_operand.vmem [shape: f32[2,8,256], index: 0, kind: input, shape index: {}]   ;;  %s1883_s1 = inlined_call_operand.hbm [shape: f32[40,200], index: 1, kind: input, shape index: {}]   ;;  %s1884_s2 = inlined_call_operand.hbm [shape: f32[25,1,256], index: 2, kind: input, shape index: {}]   ;;  %s1885_s3 = inlined_call_operand.vmem [shape: f32[40,1], index: 3, kind: input, shape index: {}]   ;;  %s1886_s4 = inlined_call_operand.hbm [shape: f32[2,40,256], index: 4, kind: output, shape index: {}]  }
   0x1   :  { %10 = vsyncpa [#allocation6], 0 }
   0x2   :  { %11 = vsyncpa [#allocation4], 0  ;;  %s18_s17 = sshll.u32 %s1883_s1, 4  ;;  %s1244_s18 = smov [#allocation2]   ;;  %s19_s17 = int_to_ptr.hbm [resolvable:$true] %s18_s17 }
   0x3   :  { %s20_s19 = sshll.u32 %s1244_s18, 4  ;;  %s31_s22 = sshll.u32 %s1884_s2, 4  ;;  %s21_s19 = int_to_ptr.vmem [resolvable:$true] %s20_s19  ;;  %s32_s22 = int_to_ptr.hbm [resolvable:$true] %s31_s22 }
   0x4   :  { %s1245_s23 = smov 256   ;;  %s1246_s24 = smov 16  }
   0x5   :  { %26 = dma.hbm_to_vmem [thread:$0]  %s19_s17, 1280, %s21_s19, [#allocation3], %s1245_s23, %s1245_s23, %s1246_s24  }
   0x6   :  { %s1247_s25 = smov [#allocation5]   ;;  %s1248_s27 = smov 32  }
   0x7   :  { %s33_s26 = sshll.u32 %s1247_s25, 4  ;;  %s1249_s1 = smov 2   ;;  %s34_s26 = int_to_ptr.vmem [resolvable:$true] %s33_s26 }
   0x8   :  { %39 = dma.hbm_to_vmem [thread:$0]  %s32_s22, 800, %s34_s26, [#allocation6], %s1248_s27, %s1248_s27, %s1249_s1  }
   0x9   :  { %1238 = dma.done.wait [#allocation3], 1280  }
   0xa   :  { %1239 = vsyncadd [#allocation3], 4294966016 }
   0xb   :  { %1240 = dma.done.wait [#allocation6], 800  }
   0xc   :  { %1241 = vsyncadd [#allocation6], 4294966496  ;;  %v1309_v0 = vld [vmem:[%s1882_s0] sm:$0xff]  ;;  %s1250_s29 = smov 68   ;;  %s1251_s30 = smov 64   ;;  %v1320_v1 = vld [vmem:[%s1882_s0 + $0x8] sm:$0xff]  ;;  %v71_v7 = vlaneseq }
   0xd   :  { %197 = vrot.lane.b32.xlu1 %v1309_v0, %s1250_s29  ;;  %213 = vrot.lane.b32.xlu0 %v1309_v0, %s1251_s30  ;;  %s1252_s5 = smov 124   ;;  %s1253_s8 = smov 4   ;;  %v1395_v3 = vld [vmem:[%s1882_s0 + $0x10] sm:$0xff]  ;;  %v1402_v5 = vld [vmem:[%s1882_s0 + $0x18] sm:$0xff]  ;;  %v287_v12 = vld [vmem:[#allocation5 + $0x1e] sm:$0x3] }
   0xe   :  { %261 = vrot.lane.b32.xlu2 %v1309_v0, %s1252_s5  ;;  %s1254_s9 = smov 60   ;;  %s1255_s10 = smov 94   ;;  %v1420_v11 = vand.u32 127, %v71_v7  ;;  %v289_v13 = vperm.slane %v287_v12, 0  ;;  %v290_v14 = vperm.slane %v287_v12, 1 }
   0xf   :  { %s1256_s11 = smov 26   ;;  %s1257_s12 = smov 96   ;;  %v278_v15 = vld [vmem:[#allocation5 + $0x1c] sm:$0x3]  ;;  %v269_v18 = vld [vmem:[#allocation5 + $0x1a] sm:$0x3] }
  0x10   :  { %s1258_s13 = smov 98   ;;  %s1259_s14 = smov 38   ;;  %vm217_vm0 = vcmp.lt.s32.totalorder %v1420_v11, 64  ;;  %vm201_vm1 = vcmp.lt.s32.totalorder %v1420_v11, 68  ;;  %vm265_vm2 = vcmp.lt.s32.totalorder %v1420_v11, 124  ;;  %v280_v21 = vperm.slane %v278_v15, 0 }
  0x11   :  { %s1260_s15 = smov 126   ;;  %s1261_s16 = smov 122   ;;  %v281_v22 = vperm.slane %v278_v15, 1  ;;  %v271_v28 = vperm.slane %v269_v18, 0  ;;  %v272_v29 = vperm.slane %v269_v18, 1  ;;  %vm249_vm3 = vcmp.lt.s32.totalorder %v1420_v11, 4 }
  0x12   :  { %s1262_s17 = smov 6   ;;  %s1263_s18 = smov 30   ;;  %v253_v30 = vld [vmem:[#allocation5 + $0x18] sm:$0x3]  ;;  %v237_v46 = vld [vmem:[#allocation5 + $0x16] sm:$0x3] }
  0x13   :  { %s1264_s19 = smov 90   ;;  %s1265_s20 = smov 34   ;;  %v255_v35 = vperm.slane %v253_v30, 0  ;;  %v256_v36 = vperm.slane %v253_v30, 1  ;;  %vm233_vm4 = vcmp.lt.s32.totalorder %v1420_v11, 60  ;;  %v239_v47 = vperm.slane %v237_v46, 0 }
  0x14   :  { %s1266_s21 = smov 102   ;;  %v240_v48 = vperm.slane %v237_v46, 1  ;;  %v221_v49 = vld [vmem:[#allocation5 + $0x14] sm:$0x3]  ;;  %v205_v52 = vld [vmem:[#allocation5 + $0x12] sm:$0x3] }
  0x15   :  { %199 = vrot.lane.b32.xlu1 %v1320_v1, %s1250_s29  ;;  %215 = vrot.lane.b32.xlu0 %v1320_v1, %s1251_s30  ;;  %v223_v55 = vperm.slane %v221_v49, 0  ;;  %v224_v56 = vperm.slane %v221_v49, 1  ;;  %v189_v57 = vld [vmem:[#allocation5 + $0x10] sm:$0x3]  ;;  %vm185_vm5 = vcmp.lt.s32.totalorder %v1420_v11, 94  ;;  %v207_v61 = vperm.slane %v205_v52, 0 }
  0x16   :  { %263 = vrot.lane.b32.xlu2 %v1320_v1, %s1252_s5  ;;  %v208_v62 = vperm.slane %v205_v52, 1  ;;  %v410_v63 = vld [vmem:[#allocation5 + $0x30] sm:$0x3]  ;;  %vm406_vm6 = vcmp.lt.s32.totalorder %v1420_v11, 26  ;;  %vm169_vm7 = vcmp.lt.s32.totalorder %v1420_v11, 96  ;;  %vm89_vm8 = vcmp.lt.s32.totalorder %v1420_v11, 32 }
  0x17   :  { %v412_v12 = vperm.slane %v410_v63, 0  ;;  %vm153_vm9 = vcmp.lt.s32.totalorder %v1420_v11, 98  ;;  %v141_v52 = vld [vmem:[#allocation5 + $0xa] sm:$0x3]  ;;  %vm1888_vm10 = vcmp.lt.s32.totalorder %v1420_v11, 126  ;;  %vm381_vm11 = vcmp.lt.s32.totalorder %v1420_v11, 38 }
  0x18   :  { %vm365_vm12 = vcmp.lt.s32.totalorder %v1420_v11, 122  ;;  %vm349_vm13 = vcmp.lt.s32.totalorder %v1420_v11, 6  ;;  %vm1887_vm14 = vcmp.lt.s32.totalorder %v1420_v11, 2  ;;  %vm105_vm15 = vcmp.lt.s32.totalorder %v1420_v11, 30 }
  0x1d   :  { %247 = vrot.lane.b32.xlu1 %v1320_v1, %s1253_s8  ;;  %245 = vrot.lane.b32.xlu0 %v1309_v0, %s1253_s8 }
  0x1e   :  { %229 = vrot.lane.b32.xlu2 %v1309_v0, %s1254_s9 }
  0x25   :  { %181 = vrot.lane.b32.xlu1 %v1309_v0, %s1255_s10  ;;  %231 = vrot.lane.b32.xlu0 %v1320_v1, %s1254_s9 }
  0x26   :  { %183 = vrot.lane.b32.xlu2 %v1320_v1, %s1255_s10 }
  0x2d   :  { %404 = vrot.lane.b32.xlu1 %v1320_v1, %s1256_s11  ;;  %402 = vrot.lane.b32.xlu0 %v1309_v0, %s1256_s11 }
  0x2e   :  { %85 = vrot.lane.b32.xlu2 %v1309_v0, %s1248_s27 }
  0x35   :  { %165 = vrot.lane.b32.xlu1 %v1309_v0, %s1257_s12  ;;  %87 = vrot.lane.b32.xlu0 %v1320_v1, %s1248_s27 }
  0x36   :  { %167 = vrot.lane.b32.xlu2 %v1320_v1, %s1257_s12 }
  0x3d   :  { %151 = vrot.lane.b32.xlu1 %v1320_v1, %s1258_s13  ;;  %149 = vrot.lane.b32.xlu0 %v1309_v0, %s1258_s13 }
  0x3e   :  { %377 = vrot.lane.b32.xlu2 %v1309_v0, %s1259_s14 }
  0x45   :  { %133 = vrot.lane.b32.xlu1 %v1309_v0, %s1260_s15  ;;  %379 = vrot.lane.b32.xlu0 %v1320_v1, %s1259_s14 }
  0x46   :  { %135 = vrot.lane.b32.xlu2 %v1320_v1, %s1260_s15 }
  0x4d   :  { %363 = vrot.lane.b32.xlu1 %v1320_v1, %s1261_s16  ;;  %361 = vrot.lane.b32.xlu0 %v1309_v0, %s1261_s16 }
  0x4e   :  { %117 = vrot.lane.b32.xlu2 %v1309_v0, %s1249_s1 }
  0x55   :  { %345 = vrot.lane.b32.xlu1 %v1309_v0, %s1262_s17  ;;  %119 = vrot.lane.b32.xlu0 %v1320_v1, %s1249_s1 }
  0x56   :  { %347 = vrot.lane.b32.xlu2 %v1320_v1, %s1262_s17 }
  0x5d   :  { %103 = vrot.lane.b32.xlu1 %v1320_v1, %s1263_s18  ;;  %101 = vrot.lane.b32.xlu0 %v1309_v0, %s1263_s18 }
  0x5e   :  { %329 = vrot.lane.b32.xlu2 %v1309_v0, %s1264_s19 }
  0x65   :  { %67 = vrot.lane.b32.xlu1 %v1309_v0, %s1265_s20  ;;  %331 = vrot.lane.b32.xlu0 %v1320_v1, %s1264_s19 }
  0x66   :  { %69 = vrot.lane.b32.xlu2 %v1320_v1, %s1265_s20 }
  0x68   :  { %v262_v2 = vpop.permute.xlu2 %261 }
  0x6d   :  { %306 = vrot.lane.b32.xlu1 %v1320_v1, %s1266_s21  ;;  %304 = vrot.lane.b32.xlu0 %v1309_v0, %s1266_s21 }
  0x6e   :  { %748 = vrot.lane.b32.xlu2 %v1395_v3, %s1251_s30 }
  0x70   :  { %v264_v4 = vpop.permute.xlu2 %263 }
  0x71   :  { %v266_v31 = vsel %vm265_vm2, %v262_v2, %v264_v4  ;;  %v267_v32 = vsel %vm265_vm2, %v264_v4, %v262_v2  ;;  %v191_v2 = vperm.slane %v189_v57, 0 }
  0x72   :  { %v275_v37 = vmul.f32 %v271_v28, %v266_v31  ;;  %v276_v38 = vmul.f32 %v272_v29, %v267_v32 }
  0x75   :  { %734 = vrot.lane.b32.xlu1 %v1395_v3, %s1250_s29  ;;  %750 = vrot.lane.b32.xlu0 %v1402_v5, %s1251_s30 }
  0x76   :  { %736 = vrot.lane.b32.xlu2 %v1402_v5, %s1250_s29 }
  0x78   :  { %v1410_v6 = vpop.permute.xlu2 %229 }
  0x7d   :  { %792 = vrot.lane.b32.xlu1 %v1402_v5, %s1252_s5  ;;  %790 = vrot.lane.b32.xlu0 %v1395_v3, %s1252_s5 }
  0x7e   :  { %776 = vrot.lane.b32.xlu2 %v1395_v3, %s1253_s8 }
  0x7f   :  { %v198_v8 = vpop.permute.xlu1 %197  ;;  %v214_v9 = vpop.permute.xlu0 %213 }
  0x80   :  { %v1418_v10 = vpop.permute.xlu2 %183 }
  0x85   :  { %762 = vrot.lane.b32.xlu1 %v1395_v3, %s1254_s9  ;;  %778 = vrot.lane.b32.xlu0 %v1402_v5, %s1253_s8 }
  0x86   :  { %764 = vrot.lane.b32.xlu2 %v1402_v5, %s1254_s9 }
  0x87   :  { %v200_v16 = vpop.permute.xlu1 %199  ;;  %v216_v17 = vpop.permute.xlu0 %215 }
  0x88   :  { %v1433_v19 = vsel %vm217_vm0, %v214_v9, %v216_v17  ;;  %v1437_v20 = vsel %vm217_vm0, %v216_v17, %v214_v9  ;;  %v1439_v23 = vpop.permute.xlu2 %85  ;;  %v1443_v24 = vsel %vm201_vm1, %v198_v8, %v200_v16  ;;  %v1447_v25 = vsel %vm201_vm1, %v200_v16, %v198_v8 }
  0x89   :  { %v293_v26 = vmul.f32 %v289_v13, %v1433_v19  ;;  %v294_v27 = vmul.f32 %v290_v14, %v1437_v20  ;;  %v284_v33 = vmul.f32 %v280_v21, %v1443_v24  ;;  %v285_v34 = vmul.f32 %v281_v22, %v1447_v25 }
  0x8a   :  { %v228_v7 = vmul.f32 %v224_v56, %v1433_v19  ;;  %v192_v8 = vperm.slane %v189_v57, 1  ;;  %v413_v13 = vperm.slane %v410_v63, 1  ;;  %v211_v14 = vmul.f32 %v207_v61, %v1447_v25 }
  0x8b   :  { %434 = vmatpush.msra.mxu0 %v293_v26  ;;  %498 = vmatpush.msra.mxu2 %v294_v27  ;;  %v212_v15 = vmul.f32 %v208_v62, %v1443_v24  ;;  %v394_v24 = vld [vmem:[#allocation5 + $0x2e] sm:$0x3]  ;;  %v143_v57 = vperm.slane %v141_v52, 0 }
  0x8c   :  { %v173_v26 = vld [vmem:[#allocation5 + $0xe] sm:$0x3]  ;;  %v396_v27 = vperm.slane %v394_v24, 0  ;;  %v397_v28 = vperm.slane %v394_v24, 1 }
  0x8d   :  { %916 = vrot.lane.b32.xlu1 %v1402_v5, %s1256_s11  ;;  %914 = vrot.lane.b32.xlu0 %v1395_v3, %s1256_s11  ;;  %v175_v29 = vperm.slane %v173_v26, 0  ;;  %v176_v30 = vperm.slane %v173_v26, 1 }
  0x8e   :  { %435 = vmatpush.msra.mxu0 %v284_v33  ;;  %499 = vmatpush.msra.mxu2 %v285_v34 }
  0x8f   :  { %v248_v39 = vpop.permute.xlu1 %247  ;;  %v246_v40 = vpop.permute.xlu0 %245  ;;  %636 = vrot.lane.b32.xlu2 %v1395_v3, %s1248_s27 }
  0x90   :  { %436 = vmatpush.msra.mxu0 %v275_v37  ;;  %500 = vmatpush.msra.mxu2 %v276_v38  ;;  %v250_v41 = vsel %vm249_vm3, %v246_v40, %v248_v39  ;;  %v251_v42 = vsel %vm249_vm3, %v248_v39, %v246_v40  ;;  %v1468_v43 = vpop.permute.xlu2 %167 }
  0x91   :  { %v259_v44 = vmul.f32 %v255_v35, %v251_v42  ;;  %v260_v45 = vmul.f32 %v256_v36, %v250_v41  ;;  %v157_v42 = vld [vmem:[#allocation5 + $0xc] sm:$0x3] }
  0x93   :  { %437 = vmatpush.msra.mxu0 %v259_v44  ;;  %501 = vmatpush.msra.mxu2 %v260_v45 }
  0x95   :  { %892 = vrot.lane.b32.xlu1 %v1395_v3, %s1259_s14  ;;  %638 = vrot.lane.b32.xlu0 %v1402_v5, %s1248_s27 }
  0x97   :  { %v182_v50 = vpop.permute.xlu1 %181  ;;  %v232_v51 = vpop.permute.xlu0 %231  ;;  %894 = vrot.lane.b32.xlu2 %v1402_v5, %s1259_s14 }
  0x98   :  { %v1480_v53 = vsel %vm233_vm4, %v1410_v6, %v232_v51  ;;  %v1485_v54 = vsel %vm233_vm4, %v232_v51, %v1410_v6  ;;  %v1487_v58 = vpop.permute.xlu2 %377  ;;  %v186_v4 = vsel %vm185_vm5, %v182_v50, %v1418_v10  ;;  %v227_v6 = vmul.f32 %v223_v55, %v1437_v20  ;;  %v385_v51 = vld [vmem:[#allocation5 + $0x2c] sm:$0x3] }
  0x99   :  { %v243_v59 = vmul.f32 %v239_v47, %v1485_v54  ;;  %v244_v60 = vmul.f32 %v240_v48, %v1480_v53  ;;  %v187_v9 = vsel %vm185_vm5, %v1418_v10, %v182_v50  ;;  %v195_v18 = vmul.f32 %v191_v2, %v186_v4 }
  0x9a   :  { %v196_v10 = vmul.f32 %v192_v8, %v187_v9  ;;  %v387_v55 = vperm.slane %v385_v51, 0  ;;  %v388_v56 = vperm.slane %v385_v51, 1 }
  0x9b   :  { %438 = vmatpush.msra.mxu0 %v243_v59  ;;  %502 = vmatpush.msra.mxu2 %v244_v60  ;;  %v144_v59 = vperm.slane %v141_v52, 1 }
  0x9d   :  { %722 = vrot.lane.b32.xlu1 %v1402_v5, %s1255_s10  ;;  %720 = vrot.lane.b32.xlu0 %v1395_v3, %s1255_s10 }
  0x9e   :  { %439 = vmatpush.msra.mxu0 %v227_v6  ;;  %503 = vmatpush.msra.mxu2 %v228_v7 }
  0x9f   :  { %v405_v16 = vpop.permute.xlu1 %404  ;;  %v403_v17 = vpop.permute.xlu0 %402  ;;  %878 = vrot.lane.b32.xlu2 %v1395_v3, %s1261_s16 }
  0xa0   :  { %440 = vmatpush.msra.mxu0 %v211_v14  ;;  %504 = vmatpush.msra.mxu2 %v212_v15  ;;  %v407_v19 = vsel %vm406_vm6, %v403_v17, %v405_v16  ;;  %v408_v20 = vsel %vm406_vm6, %v405_v16, %v403_v17  ;;  %v1513_v21 = vpop.permute.xlu2 %135 }
  0xa1   :  { %v416_v22 = vmul.f32 %v412_v12, %v407_v19  ;;  %v417_v25 = vmul.f32 %v413_v13, %v408_v20  ;;  %v369_v13 = vld [vmem:[#allocation5 + $0x2a] sm:$0x3] }
  0xa2   :  { %441 = vmatpush.msra.mxu0 %v195_v18  ;;  %505 = vmatpush.msra.mxu2 %v196_v10  ;;  %v372_v14 = vperm.slane %v369_v13, 1 }
  0xa3   :  { %473 = vmatpush.msra.mxu1 %v416_v22  ;;  %537 = vmatpush.msra.mxu3 %v417_v25  ;;  %v353_v22 = vld [vmem:[#allocation5 + $0x28] sm:$0x3] }
  0xa4   :  { %v355_v26 = vperm.slane %v353_v22, 0 }
  0xa5   :  { %706 = vrot.lane.b32.xlu1 %v1395_v3, %s1257_s12  ;;  %880 = vrot.lane.b32.xlu0 %v1402_v5, %s1261_s16 }
  0xa7   :  { %v166_v31 = vpop.permute.xlu1 %165  ;;  %v88_v32 = vpop.permute.xlu0 %87  ;;  %708 = vrot.lane.b32.xlu2 %v1402_v5, %s1257_s12 }
  0xa8   :  { %v1526_v33 = vsel %vm169_vm7, %v166_v31, %v1468_v43  ;;  %v1531_v34 = vsel %vm169_vm7, %v1468_v43, %v166_v31  ;;  %v1536_v35 = vsel %vm89_vm8, %v1439_v23, %v88_v32  ;;  %v1541_v36 = vsel %vm89_vm8, %v88_v32, %v1439_v23  ;;  %v1543_v37 = vpop.permute.xlu2 %117 }
  0xa9   :  { %v400_v38 = vmul.f32 %v396_v27, %v1536_v35  ;;  %v401_v39 = vmul.f32 %v397_v28, %v1541_v36  ;;  %v179_v40 = vmul.f32 %v175_v29, %v1526_v33  ;;  %v180_v41 = vmul.f32 %v176_v30, %v1531_v34 }
  0xaa   :  { %v159_v23 = vperm.slane %v157_v42, 0  ;;  %v160_v43 = vperm.slane %v157_v42, 1  ;;  %v356_v27 = vperm.slane %v353_v22, 1 }
  0xab   :  { %474 = vmatpush.msra.mxu1 %v400_v38  ;;  %538 = vmatpush.msra.mxu3 %v401_v39 }
  0xac   :  { %442 = vmatpush.msra.mxu0 %v179_v40  ;;  %506 = vmatpush.msra.mxu2 %v180_v41 }
  0xad   :  { %866 = vrot.lane.b32.xlu1 %v1402_v5, %s1262_s17  ;;  %864 = vrot.lane.b32.xlu0 %v1395_v3, %s1262_s17  ;;  %s1100_s17 = sshll.u32 %s1886_s4, 4  ;;  %s1101_s17 = int_to_ptr.hbm [resolvable:$true] %s1100_s17 }
  0xaf   :  { %v152_v44 = vpop.permute.xlu1 %151  ;;  %v150_v45 = vpop.permute.xlu0 %149  ;;  %692 = vrot.lane.b32.xlu2 %v1395_v3, %s1258_s13 }
  0xb0   :  { %v154_v46 = vsel %vm153_vm9, %v150_v45, %v152_v44  ;;  %v155_v47 = vsel %vm153_vm9, %v152_v44, %v150_v45  ;;  %v348_v48 = vpop.permute.xlu2 %347  ;;  %v93_v44 = vld [vmem:[#allocation5 + $0x4] sm:$0x3] }
  0xb1   :  { %v163_v49 = vmul.f32 %v159_v23, %v154_v46  ;;  %v164_v50 = vmul.f32 %v160_v43, %v155_v47  ;;  %v109_v43 = vld [vmem:[#allocation5 + $0x6] sm:$0x3]  ;;  %v96_v51 = vperm.slane %v93_v44, 1 }
  0xb2   :  { %v112_v45 = vperm.slane %v109_v43, 1 }
  0xb3   :  { %443 = vmatpush.msra.mxu0 %v163_v49  ;;  %507 = vmatpush.msra.mxu2 %v164_v50 }
  0xb5   :  { %850 = vrot.lane.b32.xlu1 %v1395_v3, %s1264_s19  ;;  %694 = vrot.lane.b32.xlu0 %v1402_v5, %s1258_s13  ;;  %s1268_s13 = smov [#allocation7]  }
  0xb6   :  { %s1098_s14 = sshll.u32 %s1268_s13, 4  ;;  %s1099_s14 = int_to_ptr.vmem [resolvable:$true] %s1098_s14 }
  0xb7   :  { %v134_v60 = vpop.permute.xlu1 %133  ;;  %v380_v61 = vpop.permute.xlu0 %379  ;;  %852 = vrot.lane.b32.xlu2 %v1402_v5, %s1264_s19 }
  0xb8   :  { %v138_v62 = vsel %vm1888_vm10, %v134_v60, %v1513_v21  ;;  %v139_v63 = vsel %vm1888_vm10, %v1513_v21, %v134_v60  ;;  %v382_v2 = vsel %vm381_vm11, %v1487_v58, %v380_v61  ;;  %v383_v4 = vsel %vm381_vm11, %v380_v61, %v1487_v58  ;;  %v1580_v6 = vpop.permute.xlu2 %329  ;;  %v125_v21 = vld [vmem:[#allocation5 + $0x8] sm:$0x3] }
  0xb9   :  { %v391_v7 = vmul.f32 %v387_v55, %v382_v2  ;;  %v392_v8 = vmul.f32 %v388_v56, %v383_v4  ;;  %v147_v9 = vmul.f32 %v143_v57, %v138_v62  ;;  %v148_v12 = vmul.f32 %v144_v59, %v139_v63  ;;  %v337_v57 = vld [vmem:[#allocation5 + $0x26] sm:$0x3]  ;;  %v77_v59 = vld [vmem:[#allocation5 + $0x2] sm:$0x3] }
  0xba   :  { %v371_v58 = vperm.slane %v369_v13, 0  ;;  %v127_v25 = vperm.slane %v125_v21, 0  ;;  %v128_v24 = vperm.slane %v125_v21, 1  ;;  %v100_v61 = vmul.f32 %v96_v51, %v1536_v35 }
  0xbb   :  { %475 = vmatpush.msra.mxu1 %v391_v7  ;;  %539 = vmatpush.msra.mxu3 %v392_v8  ;;  %vm333_vm10 = vcmp.lt.s32.totalorder %v1420_v11, 90  ;;  %v339_v62 = vperm.slane %v337_v57, 0  ;;  %v340_v63 = vperm.slane %v337_v57, 1  ;;  %v79_v2 = vperm.slane %v77_v59, 0 }
  0xbc   :  { %444 = vmatpush.msra.mxu0 %v147_v9  ;;  %508 = vmatpush.msra.mxu2 %v148_v12  ;;  %v80_v4 = vperm.slane %v77_v59, 1 }
  0xbd   :  { %680 = vrot.lane.b32.xlu1 %v1402_v5, %s1260_s15  ;;  %678 = vrot.lane.b32.xlu0 %v1395_v3, %s1260_s15 }
  0xbf   :  { %v364_v15 = vpop.permute.xlu1 %363  ;;  %v362_v16 = vpop.permute.xlu0 %361  ;;  %664 = vrot.lane.b32.xlu2 %v1395_v3, %s1249_s1 }
  0xc0   :  { %v366_v17 = vsel %vm365_vm12, %v362_v16, %v364_v15  ;;  %v367_v18 = vsel %vm365_vm12, %v364_v15, %v362_v16  ;;  %v1593_v10 = vpop.permute.xlu2 %69 }
  0xc1   :  { %v375_v19 = vmul.f32 %v371_v58, %v366_v17  ;;  %v376_v20 = vmul.f32 %v372_v14, %v367_v18  ;;  %v312_v17 = vld [vmem:[#allocation5 + $0x22] sm:$0x3] }
  0xc2   :  { %v315_v21 = vperm.slane %v312_v17, 1 }
  0xc3   :  { %476 = vmatpush.msra.mxu1 %v375_v19  ;;  %540 = vmatpush.msra.mxu3 %v376_v20  ;;  %v296_v20 = vld [vmem:[#allocation5 + $0x20] sm:$0x3] }
  0xc5   :  { %828 = vrot.lane.b32.xlu1 %v1395_v3, %s1266_s21  ;;  %666 = vrot.lane.b32.xlu0 %v1402_v5, %s1249_s1 }
  0xc7   :  { %v346_v28 = vpop.permute.xlu1 %345  ;;  %v120_v29 = vpop.permute.xlu0 %119  ;;  %830 = vrot.lane.b32.xlu2 %v1402_v5, %s1266_s21 }
  0xc8   :  { %v350_v30 = vsel %vm349_vm13, %v346_v28, %v348_v48  ;;  %v351_v31 = vsel %vm349_vm13, %v348_v48, %v346_v28  ;;  %v122_v32 = vsel %vm1887_vm14, %v1543_v37, %v120_v29  ;;  %v123_v38 = vsel %vm1887_vm14, %v120_v29, %v1543_v37  ;;  %v1613_v39 = vpop.permute.xlu2 %748  ;;  %v812_v29 = vld [vmem:[#allocation5 + $0x1e] sm:$0x3] }
  0xc9   :  { %v131_v40 = vmul.f32 %v127_v25, %v123_v38  ;;  %v132_v41 = vmul.f32 %v128_v24, %v122_v32  ;;  %v359_v42 = vmul.f32 %v355_v26, %v351_v31  ;;  %v360_v23 = vmul.f32 %v356_v27, %v350_v30  ;;  %v804_v30 = vld [vmem:[#allocation5 + $0x1c] sm:$0x3] }
  0xca   :  { %v111_v37 = vperm.slane %v109_v43, 0  ;;  %v95_v48 = vperm.slane %v93_v44, 0  ;;  %vm1889_vm14 = vcmp.lt.s32.totalorder %v1420_v11, 34  ;;  %v298_v24 = vperm.slane %v296_v20, 0 }
  0xcb   :  { %445 = vmatpush.msra.mxu0 %v131_v40  ;;  %509 = vmatpush.msra.mxu2 %v132_v41  ;;  %v299_v26 = vperm.slane %v296_v20, 1  ;;  %v814_v32 = vperm.slane %v812_v29, 0  ;;  %v815_v38 = vperm.slane %v812_v29, 1  ;;  %v806_v40 = vperm.slane %v804_v30, 0  ;;  %v1697_v29 = vld [vmem:[#allocation2] sm:$0xff] }
  0xcc   :  { %477 = vmatpush.msra.mxu1 %v359_v42  ;;  %541 = vmatpush.msra.mxu3 %v360_v23  ;;  %v99_v60 = vmul.f32 %v95_v48, %v1541_v36  ;;  %v807_v41 = vperm.slane %v804_v30, 1  ;;  %v796_v48 = vld [vmem:[#allocation5 + $0x1a] sm:$0x3] }
  0xcd   :  { %652 = vrot.lane.b32.xlu1 %v1402_v5, %s1263_s18  ;;  %650 = vrot.lane.b32.xlu0 %v1395_v3, %s1263_s18  ;;  %v1699_v30 = vld [vmem:[#allocation2 + $0x8] sm:$0xff] }
  0xcf   :  { %v104_v46 = vpop.permute.xlu1 %103  ;;  %v102_v47 = vpop.permute.xlu0 %101  ;;  %622 = vrot.lane.b32.xlu2 %v1395_v3, %s1265_s20  ;;  %v321_v3 = vld [vmem:[#allocation5 + $0x24] sm:$0x3] }
  0xd0   :  { %v106_v49 = vsel %vm105_vm15, %v102_v47, %v104_v46  ;;  %v107_v50 = vsel %vm105_vm15, %v104_v46, %v102_v47  ;;  %v1626_v52 = vpop.permute.xlu2 %736  ;;  %v323_v9 = vperm.slane %v321_v3, 0  ;;  %v324_v36 = vperm.slane %v321_v3, 1  ;;  %v754_v3 = vld [vmem:[#allocation5 + $0x14] sm:$0x3] }
  0xd1   :  { %v115_v55 = vmul.f32 %v111_v37, %v107_v50  ;;  %v116_v56 = vmul.f32 %v112_v45, %v106_v49  ;;  %v798_v49 = vperm.slane %v796_v48, 0  ;;  %v799_v50 = vperm.slane %v796_v48, 1 }
  0xd2   :  { %v327_v19 = vmul.f32 %v323_v9, %v1531_v34  ;;  %v756_v9 = vperm.slane %v754_v3, 0 }
  0xd3   :  { %446 = vmatpush.msra.mxu0 %v115_v55  ;;  %510 = vmatpush.msra.mxu2 %v116_v56 }
  0xd5   :  { %624 = vrot.lane.b32.xlu0 %v1402_v5, %s1265_s20  ;;  %447 = vmatpush.msra.mxu0 %v99_v60  ;;  %v782_v60 = vld [vmem:[#allocation5 + $0x18] sm:$0x3] }
  0xd6   :  { %511 = vmatpush.msra.mxu2 %v100_v61  ;;  %v768_v61 = vld [vmem:[#allocation5 + $0x16] sm:$0x3] }
  0xd7   :  { %v68_v7 = vpop.permute.xlu1 %67  ;;  %v332_v8 = vpop.permute.xlu0 %331 }
  0xd8   :  { %v74_v35 = vsel %vm1889_vm14, %v68_v7, %v1593_v10  ;;  %v75_v12 = vsel %vm1889_vm14, %v1593_v10, %v68_v7  ;;  %v334_v5 = vsel %vm333_vm10, %v1580_v6, %v332_v8  ;;  %v335_v13 = vsel %vm333_vm10, %v332_v8, %v1580_v6  ;;  %v1646_v18 = vpop.permute.xlu2 %776 }
  0xd9   :  { %v343_v58 = vmul.f32 %v339_v62, %v335_v13  ;;  %v344_v14 = vmul.f32 %v340_v63, %v334_v5  ;;  %v83_v15 = vmul.f32 %v79_v2, %v75_v12  ;;  %v84_v16 = vmul.f32 %v80_v4, %v74_v35 }
  0xda   :  { %v328_v10 = vmul.f32 %v324_v36, %v1526_v33  ;;  %vm308_vm14 = vcmp.lt.s32.totalorder %v1420_v11, 102  ;;  %v314_v6 = vperm.slane %v312_v17, 0  ;;  %v784_v62 = vperm.slane %v782_v60, 0 }
  0xdb   :  { %478 = vmatpush.msra.mxu1 %v343_v58  ;;  %542 = vmatpush.msra.mxu3 %v344_v14  ;;  %v785_v63 = vperm.slane %v782_v60, 1  ;;  %v770_v2 = vperm.slane %v768_v61, 0  ;;  %v771_v4 = vperm.slane %v768_v61, 1  ;;  %v757_v36 = vperm.slane %v754_v3, 1  ;;  %v740_v58 = vld [vmem:[#allocation5 + $0x12] sm:$0x3] }
  0xdc   :  { %448 = vmatpush.msra.mxu0 %v83_v15  ;;  %512 = vmatpush.msra.mxu2 %v84_v16  ;;  %v742_v20 = vperm.slane %v740_v58, 0  ;;  %v1739_v3 = vld [vmem:[#allocation2 + $0x20] sm:$0xff] }
  0xdd   :  { %479 = vmatpush.msra.mxu1 %v327_v19  ;;  %543 = vmatpush.msra.mxu3 %v328_v10  ;;  %v920_v10 = vld [vmem:[#allocation5 + $0x30] sm:$0x3] }
  0xde   :  { %449 = vmatpush.msra.mxu0 %v1309_v0  ;;  %513 = vmatpush.msra.mxu2 %v1320_v1  ;;  %v302_v0 = vmul.f32 %v298_v24, %v1480_v53  ;;  %v303_v1 = vmul.f32 %v299_v26, %v1485_v54  ;;  %v923_v24 = vperm.slane %v920_v10, 1 }
  0xdf   :  { %v307_v22 = vpop.permute.xlu1 %306  ;;  %v305_v25 = vpop.permute.xlu0 %304  ;;  %514 = vmatmul.f32.vlgmr.msra.gmra.mxu2 %v1697_v29  ;;  %450 = vmatmul.f32.vlgmr.msra.gmra.mxu0 %v1697_v29 }
  0xe0   :  { %v309_v33 = vsel %vm308_vm14, %v305_v25, %v307_v22  ;;  %v310_v34 = vsel %vm308_vm14, %v307_v22, %v305_v25  ;;  %v765_v31 = vpop.permute.xlu2 %764  ;;  %v922_v25 = vperm.slane %v920_v10, 0 }
  0xe1   :  { %v318_v27 = vmul.f32 %v314_v6, %v310_v34  ;;  %v319_v28 = vmul.f32 %v315_v21, %v309_v33  ;;  %v743_v6 = vperm.slane %v740_v58, 1 }
  0xe3   :  { %480 = vmatpush.msra.mxu1 %v318_v27  ;;  %544 = vmatpush.msra.mxu3 %v319_v28 }
  0xe5   :  { %481 = vmatpush.msra.mxu1 %v302_v0  ;;  %545 = vmatpush.msra.mxu3 %v303_v1 }
  0xe7   :  { %v735_v42 = vpop.permute.xlu1 %734  ;;  %v751_v23 = vpop.permute.xlu0 %750 }
  0xe8   :  { %v738_v43 = vsel %vm201_vm1, %v735_v42, %v1626_v52  ;;  %v739_v44 = vsel %vm201_vm1, %v1626_v52, %v735_v42  ;;  %v752_v53 = vsel %vm217_vm0, %v1613_v39, %v751_v23  ;;  %v753_v54 = vsel %vm217_vm0, %v751_v23, %v1613_v39 }
  0xe9   :  { %v818_v37 = vmul.f32 %v814_v32, %v752_v53  ;;  %v819_v45 = vmul.f32 %v815_v38, %v753_v54  ;;  %v810_v46 = vmul.f32 %v806_v40, %v738_v43  ;;  %v811_v47 = vmul.f32 %v807_v41, %v739_v44  ;;  %v1671_v51 = vpop.permute.xlu2 %636  ;;  %v898_v32 = vld [vmem:[#allocation5 + $0x2c] sm:$0x3] }
  0xea   :  { %v760_v21 = vmul.f32 %v756_v9, %v753_v54  ;;  %v761_v22 = vmul.f32 %v757_v36, %v752_v53  ;;  %v746_v33 = vmul.f32 %v742_v20, %v739_v44  ;;  %v747_v34 = vmul.f32 %v743_v6, %v738_v43  ;;  %v1764_v6 = vld [vmem:[#allocation2 + $0x30] sm:$0xff] }
  0xeb   :  { %928 = vmatpush.msrb.mxu1 %v818_v37  ;;  %992 = vmatpush.msrb.mxu0 %v819_v45  ;;  %vm418_vm0 = vcmask 588800   ;;  %v900_v42 = vperm.slane %v898_v32, 0  ;;  %v901_v23 = vperm.slane %v898_v32, 1  ;;  %v1267_v9 = vmov 0   ;;  %v1782_v32 = vld [vmem:[#allocation2 + $0x40] sm:$0xff] }
  0xec   :  { %1119 = vmatmul.msk.f32.vlgmr.msra.gmra.mxu3 %vm418_vm0, %v1699_v30  ;;  %1114 = vmatmul.msk.f32.vlgmr.msra.gmra.mxu1 %vm418_vm0, %v1699_v30  ;;  %vm1890_vm1 = vcmp.lt.s32.totalorder %v1420_v11, 126 }
  0xed   :  { %929 = vmatpush.msrb.mxu1 %v810_v46  ;;  %993 = vmatpush.msrb.mxu0 %v811_v47  ;;  %v1723_v46 = vld [vmem:[#allocation2 + $0x10] sm:$0xff]  ;;  %v1725_v47 = vld [vmem:[#allocation2 + $0x18] sm:$0xff] }
  0xee   :  { %517 = vmatmul.f32.gmra.mxu2 %v1723_v46  ;;  %453 = vmatmul.f32.gmra.mxu0 %v1723_v46 }
  0xef   :  { %v793_v52 = vpop.permute.xlu1 %792  ;;  %v791_v55 = vpop.permute.xlu0 %790  ;;  %1161 = vset.pattern.permute.xlu0 %v1267_v9  ;;  %1162 = vset.pattern.permute.xlu2 %v1267_v9 }
  0xf0   :  { %v794_v56 = vsel %vm265_vm2, %v791_v55, %v793_v52  ;;  %v795_v39 = vsel %vm265_vm2, %v793_v52, %v791_v55  ;;  %v726_v55 = vld [vmem:[#allocation5 + $0x10] sm:$0x3]  ;;  %1163 = vset.pattern.permute.xlu1 %v1267_v9  ;;  %vm1891_vm2 = vmmov %vm1890_vm1 }
  0xf1   :  { %v802_v57 = vmul.f32 %v798_v49, %v794_v56  ;;  %v803_v59 = vmul.f32 %v799_v50, %v795_v39  ;;  %v895_v14 = vpop.permute.xlu2 %894  ;;  %v728_v56 = vperm.slane %v726_v55, 0  ;;  %v729_v39 = vperm.slane %v726_v55, 1 }
  0xf3   :  { %930 = vmatpush.msrb.mxu1 %v802_v57  ;;  %994 = vmatpush.msrb.mxu0 %v803_v59 }
  0xf4   :  { %1120 = vmatmul.msk.f32.gmra.mxu3 %vm418_vm0, %v1725_v47  ;;  %1115 = vmatmul.msk.f32.gmra.mxu1 %vm418_vm0, %v1725_v47 }
  0xf6   :  { %520 = vmatmul.f32.gmra.mxu2 %v1739_v3  ;;  %456 = vmatmul.f32.gmra.mxu0 %v1739_v3 }
  0xf7   :  { %v763_v7 = vpop.permute.xlu1 %762  ;;  %v779_v8 = vpop.permute.xlu0 %778 }
  0xf8   :  { %v1679_v35 = vsel %vm233_vm4, %v763_v7, %v765_v31  ;;  %v1683_v12 = vsel %vm233_vm4, %v765_v31, %v763_v7  ;;  %v780_v5 = vsel %vm249_vm3, %v1646_v18, %v779_v8  ;;  %v781_v13 = vsel %vm249_vm3, %v779_v8, %v1646_v18  ;;  %v906_v31 = vld [vmem:[#allocation5 + $0x2e] sm:$0x3]  ;;  %v60_v8 = vld [vmem:[%s1885_s3] sm:$0xff] }
  0xf9   :  { %v788_v15 = vmul.f32 %v784_v62, %v781_v13  ;;  %v789_v16 = vmul.f32 %v785_v63, %v780_v5  ;;  %v774_v17 = vmul.f32 %v770_v2, %v1683_v12  ;;  %v775_v19 = vmul.f32 %v771_v4, %v1679_v35  ;;  %v1701_v38 = vpop.permute.xlu2 %878  ;;  %v1741_v62 = vld [vmem:[#allocation2 + $0x28] sm:$0xff]  ;;  %v884_v4 = vld [vmem:[#allocation5 + $0x2a] sm:$0x3]  ;;  %v712_v7 = vld [vmem:[#allocation5 + $0xe] sm:$0x3]  ;;  %564 = vperm.xlu0 %1161, %v60_v8  }
  0xfa   :  { %v908_v40 = vperm.slane %v906_v31, 0  ;;  %v909_v41 = vperm.slane %v906_v31, 1  ;;  %v886_v36 = vperm.slane %v884_v4, 0  ;;  %v887_v5 = vperm.slane %v884_v4, 1 }
  0xfb   :  { %931 = vmatpush.msrb.mxu1 %v788_v15  ;;  %995 = vmatpush.msrb.mxu0 %v789_v16  ;;  %v714_v13 = vperm.slane %v712_v7, 0  ;;  %v715_v58 = vperm.slane %v712_v7, 1  ;;  %v684_v7 = vld [vmem:[#allocation5 + $0xa] sm:$0x3]  ;;  %vm1892_vm3 = vcmp.lt.s32.totalorder %v1420_v11, 2 }
  0xfc   :  { %1121 = vmatmul.msk.f32.gmra.mxu3 %vm418_vm0, %v1741_v62  ;;  %1116 = vmatmul.msk.f32.gmra.mxu1 %vm418_vm0, %v1741_v62  ;;  %vm1893_vm4 = vmmov %vm1892_vm3 }
  0xfd   :  { %932 = vmatpush.msrb.mxu1 %v774_v17  ;;  %996 = vmatpush.msrb.mxu0 %v775_v19 }
  0xfe   :  { %523 = vmatmul.f32.gmra.mxu2 %v1764_v6  ;;  %459 = vmatmul.f32.gmra.mxu0 %v1764_v6 }
  0xff   :  { %v917_v18 = vpop.permute.xlu1 %916  ;;  %933 = vmatpush.msrb.mxu1 %v760_v21  ;;  %997 = vmatpush.msrb.mxu0 %v761_v22  ;;  %v915_v26 = vpop.permute.xlu0 %914  ;;  %v1766_v21 = vld [vmem:[#allocation2 + $0x38] sm:$0xff] }
 0x100   :  { %v918_v27 = vsel %vm406_vm6, %v915_v26, %v917_v18  ;;  %v919_v28 = vsel %vm406_vm6, %v917_v18, %v915_v26  ;;  %v870_v26 = vld [vmem:[#allocation5 + $0x28] sm:$0x3] }
 0x101   :  { %934 = vmatpush.msrb.mxu1 %v746_v33  ;;  %998 = vmatpush.msrb.mxu0 %v747_v34  ;;  %v926_v0 = vmul.f32 %v922_v25, %v918_v27  ;;  %v927_v1 = vmul.f32 %v923_v24, %v919_v28  ;;  %v61_v33 = vld [vmem:[%s1885_s3 + $0x8] sm:$0xff]  ;;  %v872_v34 = vperm.slane %v870_v26, 0  ;;  %v873_v27 = vperm.slane %v870_v26, 1 }
 0x102   :  { %569 = vperm.xlu0 %1161, %v61_v33  }
 0x103   :  { %967 = vmatpush.msrb.mxu3 %v926_v0  ;;  %1031 = vmatpush.msrb.mxu2 %v927_v1 }
 0x104   :  { %1122 = vmatmul.msk.f32.gmra.mxu3 %vm418_vm0, %v1766_v21  ;;  %1117 = vmatmul.msk.f32.gmra.mxu1 %vm418_vm0, %v1766_v21 }
 0x106   :  { %526 = vmatmul.f32.gmra.mxu2 %v1782_v32  ;;  %462 = vmatmul.f32.gmra.mxu0 %v1782_v32 }
 0x107   :  { %v893_v43 = vpop.permute.xlu1 %892  ;;  %v639_v44 = vpop.permute.xlu0 %638 }
 0x108   :  { %v896_v53 = vsel %vm381_vm11, %v893_v43, %v895_v14  ;;  %v897_v54 = vsel %vm381_vm11, %v895_v14, %v893_v43  ;;  %v1716_v37 = vsel %vm89_vm8, %v1671_v51, %v639_v44  ;;  %v1721_v45 = vsel %vm89_vm8, %v639_v44, %v1671_v51  ;;  %v709_v51 = vpop.permute.xlu2 %708  ;;  %v856_v43 = vld [vmem:[#allocation5 + $0x26] sm:$0x3]  ;;  %v842_v44 = vld [vmem:[#allocation5 + $0x24] sm:$0x3] }
 0x109   :  { %v912_v48 = vmul.f32 %v908_v40, %v1716_v37  ;;  %v913_v49 = vmul.f32 %v909_v41, %v1721_v45  ;;  %v904_v50 = vmul.f32 %v900_v42, %v896_v53  ;;  %v905_v52 = vmul.f32 %v901_v23, %v897_v54  ;;  %v698_v23 = vld [vmem:[#allocation5 + $0xc] sm:$0x3]  ;;  %v62_v53 = vld [vmem:[%s1885_s3 + $0x10] sm:$0xff] }
 0x10a   :  { %v700_v54 = vperm.slane %v698_v23, 0  ;;  %574 = vperm.xlu0 %1161, %v62_v53  }
 0x10b   :  { %968 = vmatpush.msrb.mxu3 %v912_v48  ;;  %1032 = vmatpush.msrb.mxu2 %v913_v49  ;;  %v858_v48 = vperm.slane %v856_v43, 0  ;;  %v701_v49 = vperm.slane %v698_v23, 1 }
 0x10d   :  { %969 = vmatpush.msrb.mxu3 %v904_v50  ;;  %1033 = vmatpush.msrb.mxu2 %v905_v52  ;;  %v859_v50 = vperm.slane %v856_v43, 1 }
 0x10f   :  { %v723_v57 = vpop.permute.xlu1 %722  ;;  %v721_v59 = vpop.permute.xlu0 %720 }
 0x110   :  { %v724_v60 = vsel %vm185_vm5, %v721_v59, %v723_v57  ;;  %v725_v61 = vsel %vm185_vm5, %v723_v57, %v721_v59  ;;  %v693_v14 = vpop.permute.xlu2 %692  ;;  %vm1894_vm5 = vcmp.lt.s32.totalorder %v1420_v11, 34 }
 0x111   :  { %v732_v63 = vmul.f32 %v728_v56, %v724_v60  ;;  %v733_v2 = vmul.f32 %v729_v39, %v725_v61  ;;  %v845_v56 = vperm.slane %v842_v44, 1  ;;  %vm1895_vm6 = vmmov %vm1894_vm5 }
 0x113   :  { %935 = vmatpush.msrb.mxu1 %v732_v63  ;;  %999 = vmatpush.msrb.mxu0 %v733_v2 }
 0x117   :  { %v707_v15 = vpop.permute.xlu1 %706  ;;  %v881_v16 = vpop.permute.xlu0 %880 }
 0x118   :  { %v1754_v17 = vsel %vm169_vm7, %v707_v15, %v709_v51  ;;  %v711_v19 = vsel %vm169_vm7, %v709_v51, %v707_v15  ;;  %v882_v10 = vsel %vm365_vm12, %v1701_v38, %v881_v16  ;;  %v883_v20 = vsel %vm365_vm12, %v881_v16, %v1701_v38  ;;  %v1784_v38 = vld [vmem:[#allocation2 + $0x48] sm:$0xff]  ;;  %v853_v42 = vpop.permute.xlu2 %852 }
 0x119   :  { %v890_v22 = vmul.f32 %v886_v36, %v882_v10  ;;  %v891_v25 = vmul.f32 %v887_v5, %v883_v20  ;;  %v718_v24 = vmul.f32 %v714_v13, %v1754_v17  ;;  %v719_v18 = vmul.f32 %v715_v58, %v711_v19  ;;  %1123 = vmatmul.msk.f32.gmra.mxu3 %vm418_vm0, %v1784_v38  ;;  %v63_v36 = vld [vmem:[%s1885_s3 + $0x18] sm:$0xff] }
 0x11a   :  { %1118 = vmatmul.msk.f32.gmra.mxu1 %vm418_vm0, %v1784_v38  ;;  %v844_v51 = vperm.slane %v842_v44, 0  ;;  %v849_v5 = vmul.f32 %v845_v56, %v1754_v17  ;;  %v686_v13 = vperm.slane %v684_v7, 0  ;;  %v687_v58 = vperm.slane %v684_v7, 1  ;;  %579 = vperm.xlu0 %1161, %v63_v36   ;;  %v820_v17 = vld [vmem:[#allocation5 + $0x20] sm:$0x3] }
 0x11b   :  { %970 = vmatpush.msrb.mxu3 %v890_v22  ;;  %1034 = vmatpush.msrb.mxu2 %v891_v25  ;;  %v670_v22 = vld [vmem:[#allocation5 + $0x8] sm:$0x3]  ;;  %v834_v25 = vld [vmem:[#allocation5 + $0x22] sm:$0x3] }
 0x11c   :  { %936 = vmatpush.msrb.mxu1 %v718_v24  ;;  %1000 = vmatpush.msrb.mxu0 %v719_v18  ;;  %v848_v8 = vmul.f32 %v844_v51, %v711_v19  ;;  %v672_v18 = vperm.slane %v670_v22, 0  ;;  %v836_v26 = vperm.slane %v834_v25, 0  ;;  %v673_v33 = vperm.slane %v670_v22, 1 }
 0x11f   :  { %v867_v28 = vpop.permute.xlu1 %866  ;;  %v865_v0 = vpop.permute.xlu0 %864 }
 0x120   :  { %v868_v1 = vsel %vm349_vm13, %v865_v0, %v867_v28  ;;  %v869_v31 = vsel %vm349_vm13, %v867_v28, %v865_v0  ;;  %v665_v9 = vpop.permute.xlu2 %664  ;;  %v822_v0 = vperm.slane %v820_v17, 0 }
 0x121   :  { %v876_v40 = vmul.f32 %v872_v34, %v869_v31  ;;  %v877_v41 = vmul.f32 %v873_v27, %v868_v1  ;;  %v837_v34 = vperm.slane %v834_v25, 1  ;;  %v823_v1 = vperm.slane %v820_v17, 1 }
 0x123   :  { %971 = vmatpush.msrb.mxu3 %v876_v40  ;;  %1035 = vmatpush.msrb.mxu2 %v877_v41 }
 0x127   :  { %v851_v52 = vpop.permute.xlu1 %850  ;;  %v695_v55 = vpop.permute.xlu0 %694 }
 0x128   :  { %v854_v39 = vsel %vm333_vm10, %v851_v52, %v853_v42  ;;  %v855_v57 = vsel %vm333_vm10, %v853_v42, %v851_v52  ;;  %v696_v59 = vsel %vm153_vm9, %v693_v14, %v695_v55  ;;  %v697_v60 = vsel %vm153_vm9, %v695_v55, %v693_v14  ;;  %v831_v24 = vpop.permute.xlu2 %830 }
 0x129   :  { %v704_v61 = vmul.f32 %v700_v54, %v696_v59  ;;  %v862_v63 = vmul.f32 %v858_v48, %v855_v57  ;;  %v705_v2 = vmul.f32 %v701_v49, %v697_v60  ;;  %v863_v4 = vmul.f32 %v859_v50, %v854_v39  ;;  %v656_v54 = vld [vmem:[#allocation5 + $0x6] sm:$0x3]  ;;  %v642_v50 = vld [vmem:[#allocation5 + $0x4] sm:$0x3] }
 0x12a   :  { %v826_v48 = vmul.f32 %v822_v0, %v1679_v35  ;;  %v827_v49 = vmul.f32 %v823_v1, %v1683_v12  ;;  %v658_v52 = vperm.slane %v656_v54, 0  ;;  %v659_v55 = vperm.slane %v656_v54, 1 }
 0x12b   :  { %937 = vmatpush.msrb.mxu1 %v704_v61  ;;  %972 = vmatpush.msrb.mxu3 %v862_v63  ;;  %v644_v39 = vperm.slane %v642_v50, 0  ;;  %v645_v57 = vperm.slane %v642_v50, 1  ;;  %v628_v61 = vld [vmem:[#allocation5 + $0x2] sm:$0x3] }
 0x12c   :  { %1001 = vmatpush.msrb.mxu0 %v705_v2  ;;  %1036 = vmatpush.msrb.mxu2 %v863_v4  ;;  %v630_v7 = vperm.slane %v628_v61, 0 }
 0x12d   :  { %973 = vmatpush.msrb.mxu3 %v848_v8  ;;  %v648_v63 = vmul.f32 %v644_v39, %v1721_v45  ;;  %v649_v2 = vmul.f32 %v645_v57, %v1716_v37 }
 0x12e   :  { %1037 = vmatpush.msrb.mxu2 %v849_v5  ;;  %v1164_v5 = vld [vmem:[%s1882_s0 + $0x10] sm:$0xff] }
 0x12f   :  { %v681_v14 = vpop.permute.xlu1 %680  ;;  %v679_v15 = vpop.permute.xlu0 %678 }
 0x130   :  { %v682_v16 = vsel %vm1890_vm1, %v679_v15, %v681_v14  ;;  %v683_v19 = vsel %vm1891_vm2, %v681_v14, %v679_v15  ;;  %v623_v4 = vpop.permute.xlu2 %622 }
 0x131   :  { %v690_v10 = vmul.f32 %v686_v13, %v682_v16  ;;  %v691_v20 = vmul.f32 %v687_v58, %v683_v19  ;;  %v1165_v13 = vld [vmem:[%s1882_s0 + $0x18] sm:$0xff] }
 0x133   :  { %938 = vmatpush.msrb.mxu1 %v690_v10  ;;  %1002 = vmatpush.msrb.mxu0 %v691_v20 }
 0x137   :  { %v829_v27 = vpop.permute.xlu1 %828  ;;  %v667_v28 = vpop.permute.xlu0 %666 }
 0x138   :  { %v832_v31 = vsel %vm308_vm14, %v829_v27, %v831_v24  ;;  %v833_v40 = vsel %vm308_vm14, %v831_v24, %v829_v27  ;;  %v668_v41 = vsel %vm1892_vm3, %v665_v9, %v667_v28  ;;  %v669_v42 = vsel %vm1893_vm4, %v667_v28, %v665_v9 }
 0x139   :  { %v676_v23 = vmul.f32 %v672_v18, %v669_v42  ;;  %v840_v43 = vmul.f32 %v836_v26, %v833_v40  ;;  %v677_v44 = vmul.f32 %v673_v33, %v668_v41  ;;  %v841_v53 = vmul.f32 %v837_v34, %v832_v31 }
 0x13b   :  { %939 = vmatpush.msrb.mxu1 %v676_v23  ;;  %974 = vmatpush.msrb.mxu3 %v840_v43 }
 0x13c   :  { %1003 = vmatpush.msrb.mxu0 %v677_v44  ;;  %1038 = vmatpush.msrb.mxu2 %v841_v53 }
 0x13d   :  { %975 = vmatpush.msrb.mxu3 %v826_v48 }
 0x13e   :  { %1039 = vmatpush.msrb.mxu2 %v827_v49  ;;  %1126 = vmatmul.msk.f32.vlgmr.msrb.gmra.mxu3 %vm418_vm0, %v1699_v30 }
 0x13f   :  { %v653_v51 = vpop.permute.xlu1 %652  ;;  %v651_v56 = vpop.permute.xlu0 %650  ;;  %1131 = vmatmul.msk.f32.vlgmr.msrb.gmra.mxu2 %vm418_vm0, %v1699_v30  ;;  %v631_v30 = vperm.slane %v628_v61, 1 }
 0x140   :  { %v654_v35 = vsel %vm105_vm15, %v651_v56, %v653_v51  ;;  %v655_v12 = vsel %vm105_vm15, %v653_v51, %v651_v56 }
 0x141   :  { %v662_v59 = vmul.f32 %v658_v52, %v655_v12  ;;  %v663_v60 = vmul.f32 %v659_v55, %v654_v35 }
 0x143   :  { %940 = vmatpush.msrb.mxu1 %v662_v59  ;;  %1004 = vmatpush.msrb.mxu0 %v663_v60 }
 0x145   :  { %941 = vmatpush.msrb.mxu1 %v648_v63  ;;  %1005 = vmatpush.msrb.mxu0 %v649_v2 }
 0x146   :  { %1127 = vmatmul.msk.f32.gmra.mxu3 %vm418_vm0, %v1725_v47 }
 0x147   :  { %v625_v8 = vpop.permute.xlu0 %624  ;;  %1132 = vmatmul.msk.f32.gmra.mxu2 %vm418_vm0, %v1725_v47 }
 0x148   :  { %v626_v9 = vsel %vm1894_vm5, %v623_v4, %v625_v8  ;;  %v627_v45 = vsel %vm1895_vm6, %v625_v8, %v623_v4 }
 0x149   :  { %v634_v36 = vmul.f32 %v630_v7, %v627_v45  ;;  %v635_v37 = vmul.f32 %v631_v30, %v626_v9 }
 0x14b   :  { %942 = vmatpush.msrb.mxu1 %v634_v36  ;;  %1006 = vmatpush.msrb.mxu0 %v635_v37 }
 0x14d   :  { %943 = vmatpush.msrb.mxu1 %v1164_v5  ;;  %1007 = vmatpush.msrb.mxu0 %v1165_v13 }
 0x14e   :  { %944 = vmatmul.f32.vlgmr.msrb.gmra.mxu1 %v1697_v29  ;;  %1008 = vmatmul.f32.vlgmr.msrb.gmra.mxu0 %v1697_v29 }
 0x14f   :  { %1128 = vmatmul.msk.f32.gmra.mxu3 %vm418_vm0, %v1741_v62  ;;  %1133 = vmatmul.msk.f32.gmra.mxu2 %vm418_vm0, %v1741_v62 }
 0x156   :  { %947 = vmatmul.f32.gmra.mxu1 %v1723_v46  ;;  %1011 = vmatmul.f32.gmra.mxu0 %v1723_v46 }
 0x157   :  { %1129 = vmatmul.msk.f32.gmra.mxu3 %vm418_vm0, %v1766_v21  ;;  %1134 = vmatmul.msk.f32.gmra.mxu2 %vm418_vm0, %v1766_v21 }
 0x15c   :  { %v451_v11 = vpop.f32.mrf.mxu0 }
 0x15e   :  { %950 = vmatmul.f32.gmra.mxu1 %v1739_v3  ;;  %1014 = vmatmul.f32.gmra.mxu0 %v1739_v3 }
 0x15f   :  { %1130 = vmatmul.msk.f32.gmra.mxu3 %vm418_vm0, %v1784_v38  ;;  %1135 = vmatmul.msk.f32.gmra.mxu2 %vm418_vm0, %v1784_v38 }
 0x162   :  { %v515_v47 = vpop.f32.mrf.mxu2 }
 0x166   :  { %953 = vmatmul.f32.gmra.mxu1 %v1764_v6  ;;  %1017 = vmatmul.f32.gmra.mxu0 %v1764_v6 }
 0x169   :  { %v483_v29 = vpop.f32.mrf.mxu1 }
 0x16a   :  { %v484_v46 = vadd.f32 %v483_v29, %v451_v11 }
 0x16b   :  { %v1867_v21 = vpop.permute.xlu0 %564  ;;  %v454_v14 = vpop.f32.mrf.mxu0 }
 0x16c   :  { %v582_v58 = vadd.f32 %v1867_v21, %v484_v46 }
 0x16e   :  { %956 = vmatmul.f32.gmra.mxu1 %v1782_v32  ;;  %1020 = vmatmul.f32.gmra.mxu0 %v1782_v32  ;;  %v590_v16 = vmax.f32 %v582_v58, 0.0 }
 0x16f   :  { %v547_v62 = vpop.f32.mrf.mxu3 }
 0x170   :  { %v548_v3 = vadd.f32 %v547_v62, %v515_v47  ;;  %598 = vst [vmem:[#allocation7] sm:$0xff] %v590_v16 }
 0x171   :  { %v486_v15 = vpop.f32.mrf.mxu1  ;;  %v518_v32 = vpop.f32.mrf.mxu2 }
 0x172   :  { %v583_v38 = vadd.f32 %v1867_v21, %v548_v3  ;;  %v487_v19 = vadd.f32 %v486_v15, %v454_v14 }
 0x173   :  { %v457_v24 = vpop.f32.mrf.mxu0 }
 0x174   :  { %v591_v6 = vmax.f32 %v583_v38, 0.0  ;;  %v570_v22 = vpop.permute.xlu0 %569 }
 0x175   :  { %v584_v25 = vadd.f32 %v570_v22, %v487_v19 }
 0x176   :  { %599 = vst [vmem:[#allocation7 + $0x8] sm:$0xff] %v591_v6 }
 0x177   :  { %v550_v10 = vpop.f32.mrf.mxu3  ;;  %v592_v18 = vmax.f32 %v584_v25, 0.0 }
 0x178   :  { %v551_v20 = vadd.f32 %v550_v10, %v518_v32 }
 0x179   :  { %v489_v33 = vpop.f32.mrf.mxu1  ;;  %600 = vst [vmem:[#allocation7 + $0x10] sm:$0xff] %v592_v18  ;;  %v521_v27 = vpop.f32.mrf.mxu2 }
 0x17a   :  { %v585_v17 = vadd.f32 %v570_v22, %v551_v20  ;;  %v490_v34 = vadd.f32 %v489_v33, %v457_v24 }
 0x17b   :  { %v460_v23 = vpop.f32.mrf.mxu0 }
 0x17c   :  { %v593_v26 = vmax.f32 %v585_v17, 0.0  ;;  %v575_v1 = vpop.permute.xlu0 %574 }
 0x17d   :  { %v586_v31 = vadd.f32 %v575_v1, %v490_v34 }
 0x17e   :  { %601 = vst [vmem:[#allocation7 + $0x18] sm:$0xff] %v593_v26 }
 0x17f   :  { %v553_v28 = vpop.f32.mrf.mxu3  ;;  %v594_v41 = vmax.f32 %v586_v31, 0.0 }
 0x180   :  { %v554_v0 = vadd.f32 %v553_v28, %v521_v27 }
 0x181   :  { %v492_v43 = vpop.f32.mrf.mxu1  ;;  %602 = vst [vmem:[#allocation7 + $0x20] sm:$0xff] %v594_v41  ;;  %v524_v53 = vpop.f32.mrf.mxu2 }
 0x182   :  { %v587_v40 = vadd.f32 %v575_v1, %v554_v0  ;;  %v493_v44 = vadd.f32 %v492_v43, %v460_v23  ;;  %v64_v43 = vld [vmem:[%s1885_s3 + $0x20] sm:$0xff] }
 0x183   :  { %v463_v56 = vpop.f32.mrf.mxu0 }
 0x184   :  { %v595_v42 = vmax.f32 %v587_v40, 0.0 }
 0x186   :  { %603 = vst [vmem:[#allocation7 + $0x28] sm:$0xff] %v595_v42 }
 0x187   :  { %v556_v54 = vpop.f32.mrf.mxu3 }
 0x188   :  { %v557_v48 = vadd.f32 %v556_v54, %v524_v53 }
 0x189   :  { %v527_v35 = vpop.f32.mrf.mxu2 }
 0x18c   :  { %v580_v49 = vpop.permute.xlu0 %579 }
 0x18d   :  { %v588_v50 = vadd.f32 %v580_v49, %v493_v44  ;;  %v589_v52 = vadd.f32 %v580_v49, %v557_v48 }
 0x18f   :  { %v596_v55 = vmax.f32 %v588_v50, 0.0  ;;  %v597_v51 = vmax.f32 %v589_v52, 0.0 }
 0x191   :  { %604 = vst [vmem:[#allocation7 + $0x30] sm:$0xff] %v596_v55 }
 0x192   :  { %605 = vst [vmem:[#allocation7 + $0x38] sm:$0xff] %v597_v51 }
 0x197   :  { %v495_v39 = vpop.f32.mrf.mxu1 }
 0x198   :  { %v496_v57 = vadd.f32 %v495_v39, %v463_v56 }
 0x19c   :  { %v559_v12 = vpop.f32.mrf.mxu3 }
 0x19d   :  { %v560_v59 = vadd.f32 %v559_v12, %v527_v35 }
 0x19f   :  { %v606_v60 = vadd.f32 %v560_v59, %v496_v57 }
 0x1a1   :  { %607 = vadd.xlane.f32.xlu1 %v606_v60 }
 0x1c1   :  { %v977_v61 = vpop.f32.mrf.mxu3 }
 0x1c2   :  { %v1041_v63 = vpop.f32.mrf.mxu2 }
 0x1c9   :  { %v980_v2 = vpop.f32.mrf.mxu3 }
 0x1ca   :  { %v1044_v4 = vpop.f32.mrf.mxu2 }
 0x1cb   :  { %v945_v7 = vpop.f32.mrf.mxu1  ;;  %v1009_v30 = vpop.f32.mrf.mxu0 }
 0x1cc   :  { %v978_v8 = vadd.f32 %v977_v61, %v945_v7  ;;  %v1042_v9 = vadd.f32 %v1041_v63, %v1009_v30 }
 0x1ce   :  { %v1056_v45 = vadd.f32 %v978_v8, %v1867_v21  ;;  %v1057_v36 = vadd.f32 %v1042_v9, %v1867_v21 }
 0x1d0   :  { %v1064_v37 = vmax.f32 %v1056_v45, 0.0  ;;  %v1065_v5 = vmax.f32 %v1057_v36, 0.0 }
 0x1d2   :  { %1073 = vst [vmem:[#allocation7 + $0x50] sm:$0xff] %v1064_v37  ;;  %v983_v47 = vpop.f32.mrf.mxu3  ;;  %v1047_v62 = vpop.f32.mrf.mxu2 }
 0x1d3   :  { %1074 = vst [vmem:[#allocation7 + $0x58] sm:$0xff] %v1065_v5  ;;  %v948_v13 = vpop.f32.mrf.mxu1  ;;  %v1012_v11 = vpop.f32.mrf.mxu0 }
 0x1d4   :  { %v981_v29 = vadd.f32 %v980_v2, %v948_v13  ;;  %v1045_v46 = vadd.f32 %v1044_v4, %v1012_v11 }
 0x1d6   :  { %v1058_v3 = vadd.f32 %v981_v29, %v570_v22  ;;  %v1059_v58 = vadd.f32 %v1045_v46, %v570_v22 }
 0x1d8   :  { %v1066_v38 = vmax.f32 %v1058_v3, 0.0  ;;  %v1067_v14 = vmax.f32 %v1059_v58, 0.0 }
 0x1da   :  { %1075 = vst [vmem:[#allocation7 + $0x60] sm:$0xff] %v1066_v38  ;;  %v986_v10 = vpop.f32.mrf.mxu3  ;;  %v1050_v20 = vpop.f32.mrf.mxu2 }
 0x1db   :  { %1076 = vst [vmem:[#allocation7 + $0x68] sm:$0xff] %v1067_v14  ;;  %v951_v15 = vpop.f32.mrf.mxu1  ;;  %v1015_v16 = vpop.f32.mrf.mxu0 }
 0x1dc   :  { %v984_v6 = vadd.f32 %v983_v47, %v951_v15  ;;  %v1048_v21 = vadd.f32 %v1047_v62, %v1015_v16 }
 0x1de   :  { %v1060_v19 = vadd.f32 %v984_v6, %v575_v1  ;;  %v1061_v32 = vadd.f32 %v1048_v21, %v575_v1 }
 0x1e0   :  { %v1068_v25 = vmax.f32 %v1060_v19, 0.0  ;;  %v1069_v17 = vmax.f32 %v1061_v32, 0.0 }
 0x1e2   :  { %1077 = vst [vmem:[#allocation7 + $0x70] sm:$0xff] %v1068_v25  ;;  %v989_v0 = vpop.f32.mrf.mxu3  ;;  %v1053_v31 = vpop.f32.mrf.mxu2 }
 0x1e3   :  { %1078 = vst [vmem:[#allocation7 + $0x78] sm:$0xff] %v1069_v17  ;;  %v954_v24 = vpop.f32.mrf.mxu1  ;;  %v1018_v18 = vpop.f32.mrf.mxu0 }
 0x1e4   :  { %v987_v26 = vadd.f32 %v986_v10, %v954_v24  ;;  %v1051_v22 = vadd.f32 %v1050_v20, %v1018_v18 }
 0x1e6   :  { %v1062_v33 = vadd.f32 %v987_v26, %v580_v49  ;;  %v1063_v34 = vadd.f32 %v1051_v22, %v580_v49 }
 0x1e8   :  { %v1070_v27 = vmax.f32 %v1062_v33, 0.0  ;;  %v1071_v28 = vmax.f32 %v1063_v34, 0.0 }
 0x1ea   :  { %1079 = vst [vmem:[#allocation7 + $0x80] sm:$0xff] %v1070_v27 }
 0x1eb   :  { %1080 = vst [vmem:[#allocation7 + $0x88] sm:$0xff] %v1071_v28  ;;  %v957_v40 = vpop.f32.mrf.mxu1  ;;  %v1021_v1 = vpop.f32.mrf.mxu0 }
 0x1ec   :  { %v990_v41 = vadd.f32 %v989_v0, %v957_v40  ;;  %v1054_v42 = vadd.f32 %v1053_v31, %v1021_v1 }
 0x1ee   :  { %v1081_v23 = vadd.f32 %v1054_v42, %v990_v41 }
 0x1f0   :  { %1082 = vadd.xlane.f32.xlu2 %v1081_v23 }
 0x214   :  { %v608_v44 = vpop.xlane.xlu1 %607 }
 0x215   :  { %v609_v53 = vmul.f32 0.00390625, %v608_v44 }
 0x217   :  { %v610_v54 = vadd.f32 %v609_v53, %v64_v43 }
 0x219   :  { %v611_v48 = vmax.f32 %v610_v54, 0.0 }
 0x21b   :  { %614 = vperm.xlu2 %1162, %v611_v48  }
 0x263   :  { %v1083_v49 = vpop.xlane.xlu2 %1082 }
 0x264   :  { %v1084_v50 = vmul.f32 0.00390625, %v1083_v49 }
 0x266   :  { %v1085_v52 = vadd.f32 %v1084_v50, %v64_v43 }
 0x268   :  { %v1086_v55 = vmax.f32 %v1085_v52, 0.0 }
 0x26a   :  { %1089 = vperm.xlu1 %1163, %v1086_v55  }
 0x275   :  { %v615_v51 = vpop.permute.xlu2 %614 }
 0x276   :  { %617 = vst [vmem:[#allocation7 + $0x40] sm:$0xff] %v615_v51 }
 0x277   :  { %618 = vst [vmem:[#allocation7 + $0x48] sm:$0xff] %v615_v51 }
 0x2dc   :  { %v1090_v56 = vpop.permute.xlu1 %1089 }
 0x2dd   :  { %1092 = vst [vmem:[#allocation7 + $0x90] sm:$0xff] %v1090_v56 }
 0x2de   :  { %1093 = vst [vmem:[#allocation7 + $0x98] sm:$0xff] %v1090_v56 }
 0x2df   :  { %1106 = dma.vmem_to_hbm [thread:$0]  %s1099_s14, 2560, %s1101_s17, [#allocation4], %s1245_s23, %s1245_s23, %s1246_s24  }
 0x2e0   :  { %1242 = dma.done.wait [#allocation4], 2560  }
 0x2e1   :  { %1243 = vsyncadd [#allocation4], 4294964736 }
 0x2e2   :  { %1111 = vsyncpa [#allocation3], 1 }
 0x2e3   :  { %1112 = vsyncpa [#allocation6], 1 }
 0x2e4   :  { %1113 = vsyncpa [#allocation4], 1 }

</bundles_post_ra>
